<compile_context>
chip_gen: v7x
topology: tpu7x:2x2x1
jax: 0.10.0
libtpu: 0.0.40
codegen_flags: <defaults>
</compile_context>

<pallas_src>
import functools

import jax
import jax.numpy as jnp
from jax.experimental import pallas as pl
from jax.experimental.pallas import tpu as pltpu

KSIZE = 9
STRIDE = 2
EPS = 1e-8  # numerical-safety eps inside rsqrt of squash
# TODO(synk): eps placement (rsqrt(||s||^2 + eps)) matches the reference used so
# far; some squash variants put eps on ||s|| in the denominator instead.


def _round_up(a, b):
    return (a + b - 1) // b * b


def conv2d_primary_layer(x, w, b, out_channels, vec_len):
    """x: [B, Cin, H, W] (NCHW, like PyTorch). w: [Cout, Cin, 9, 9]. b: [Cout]."""
    B, Cin, H, W = x.shape
    N = out_channels * vec_len
    assert w.shape == (N, Cin, KSIZE, KSIZE)
    Ho = (H - KSIZE) // STRIDE + 1
    Wo = (W - KSIZE) // STRIDE + 1

    KH2 = (KSIZE - 1) // STRIDE            # max in-phase tap offset (= 4)
    Hh, Wh = Ho + KH2, Wo + KH2            # per-phase grid the kernel reads from
    L = Hh * Wh                            # flattened per-image (padded) output grid
    Lout = _round_up(L, 128)               # lane-dense output width (unmasked vst)
    smax = KH2 * Wh + KH2                  # largest in-kernel lane shift
    Lp = _round_up(Lout + smax, 128)       # per-phase flattened length incl. halo
    Kc = Cin * KSIZE * KSIZE               # im2col contraction size (324)

    # ---- cheap O(|x|) prep: stride-2 polyphase split of the input ------------
    # xf[b, p, c, q*Wh + r] = x[b, c, 2q + rh, 2r + rw]   with p = rh*2 + rw.
    # Then x[b, c, 2i+kh, 2j+kw] = xf[b, p(kh,kw), c, (i*Wh+j) + (kh//2)*Wh + kw//2],
    # i.e. every conv tap is a constant lane shift of one phase array -> the
    # kernel can rebuild the im2col slab in VMEM with static slices only.
    xq = jnp.pad(x, ((0, 0), (0, 0), (0, 2 * Hh - H), (0, 2 * Wh - W)))
    ph = xq.reshape(B, Cin, Hh, 2, Wh, 2).transpose(0, 3, 5, 1, 2, 4)  # [B,2,2,Cin,Hh,Wh]
    xf = ph.reshape(B, 4, Cin, L)
    xf = jnp.pad(xf, ((0, 0), (0, 0), (0, 0), (0, Lp - L))).astype(jnp.bfloat16)

    # Weights: columns ordered tap-major / Cin-minor (t = kh*9 + kw), last
    # column = bias (multiplied by the constant 1.0 row of the slab).
    w2 = jnp.concatenate(
        [w[:, :, kh, kw] for kh in range(KSIZE) for kw in range(KSIZE)] + [b[:, None]],
        axis=1).astype(jnp.bfloat16)                                   # [N, Kc+1]

    # Block-diagonal "group sum" matrix: G[i, j] = 1 iff same capsule block.
    ids = jnp.arange(N) // vec_len
    g = (ids[:, None] == ids[None, :]).astype(jnp.float32)             # [N, N]

    def kernel(w_ref, g_ref, xf_ref, o_ref, slab_ref):
        # w_ref : [N, Kc+1] bf16 (resident)   xf_ref: [1, 4, Cin, Lp] bf16 (pipelined)
        # g_ref : [N, N]    f32  (resident)   o_ref : [1, N, Lout]    bf16
        # slab_ref (VMEM scratch): [Kc+1, Lout] bf16  -- in-VMEM im2col tile
        for kh in range(KSIZE):
            for kw in range(KSIZE):
                t = kh * KSIZE + kw
                p = (kh % STRIDE) * STRIDE + (kw % STRIDE)
                s = (kh // STRIDE) * Wh + (kw // STRIDE)
                slab_ref[pl.ds(t * Cin, Cin), :] = xf_ref[0, p, :, pl.ds(s, Lout)]
        slab_ref[pl.ds(Kc, 1), :] = jnp.ones((1, Lout), jnp.bfloat16)  # bias row

        feat = jnp.dot(w_ref[...], slab_ref[...],
                       preferred_element_type=jnp.float32)             # [N, Lout] f32

        # Per-capsule squared norm on the MXU (kept f32 for precision; tiny).
        sq = jnp.dot(g_ref[...], feat * feat,
                     preferred_element_type=jnp.float32)               # [N, Lout]

        # squash: s * ||s||^2 / (1 + ||s||^2) / ||s||; divide on the EUP slot.
        scale = sq * pl.reciprocal(1.0 + sq, approx=True) * jax.lax.rsqrt(sq + EPS)
        o_ref[0] = (feat * scale).astype(o_ref.dtype)

    flops = B * (2 * N * (Kc + 1) * Lout + 2 * N * N * Lout)
    bytes_accessed = (N * (Kc + 1) * 2 + N * N * 4
                      + B * 4 * Cin * Lp * 2 + B * N * Lout * 2)

    ot = pl.pallas_call(
        kernel,
        out_shape=jax.ShapeDtypeStruct((B, N, Lout), jnp.bfloat16),
        grid=(B,),
        in_specs=[
            pl.BlockSpec((N, Kc + 1), lambda i: (0, 0)),       # W2 (resident)
            pl.BlockSpec((N, N), lambda i: (0, 0)),            # G  (resident)
            pl.BlockSpec((1, 4, Cin, Lp), lambda i: (i, 0, 0, 0)),  # phases (pipelined)
        ],
        out_specs=pl.BlockSpec((1, N, Lout), lambda i: (i, 0, 0)),
        scratch_shapes=[pltpu.VMEM((Kc + 1, Lout), jnp.bfloat16)],
        compiler_params=pltpu.CompilerParams(
            dimension_semantics=("parallel",)),                # >=2 tiles -> v7x megacore
        cost_estimate=pl.CostEstimate(
            flops=flops, transcendentals=2 * B * N * Lout,
            bytes_accessed=bytes_accessed),
    )(w2, g, xf)

    # Single fused epilogue: slice valid grid, split channels into
    # (out_caps, vec_len), move vec_len last, cast back to f32.
    caps = (ot[:, :, :L]
            .reshape(B, out_channels, vec_len, Hh, Wh)[:, :, :, :Ho, :Wo]
            .transpose(0, 1, 3, 4, 2)
            .astype(jnp.float32))
    return caps


def _reference(x, w, b, out_channels, vec_len):
    """Pure-JAX f32 reference of the PyTorch forward (conv -> view -> permute -> squash)."""
    feat = jax.lax.conv_general_dilated(
        x, w, window_strides=(STRIDE, STRIDE), padding="VALID",
        dimension_numbers=("NCHW", "OIHW", "NCHW"))
    feat = feat + b.reshape(1, -1, 1, 1)
    Bv, _, Ho, Wo = feat.shape
    caps = feat.reshape(Bv, out_channels, vec_len, Ho, Wo).transpose(0, 1, 3, 4, 2)
    sq = jnp.sum(caps * caps, axis=-1, keepdims=True)
    return caps * sq / (1.0 + sq) * jax.lax.rsqrt(sq + EPS)


if __name__ == "__main__":
    # Small shapes consistent with the module: batch=2, in_channels=4,
    # spatial=16x16, out_channels(capsules)=4, vec_len=8 -> conv channels=32,
    # output grid 4x4 (kernel 9, stride 2, valid padding).
    B, Cin, H, W = 2, 4, 16, 16
    out_channels, vec_len = 4, 8
    Cout = out_channels * vec_len

    key = jax.random.PRNGKey(0)
    kx, kw, kb = jax.random.split(key, 3)
    x = jax.random.normal(kx, (B, Cin, H, W), dtype=jnp.float32)
    # TODO(synk): init_weights() of the original repo is not specified;
    # deterministic synthetic parameter init stands in for it.
    w = jax.random.normal(kw, (Cout, Cin, KSIZE, KSIZE), dtype=jnp.float32) * 0.05
    b = jax.random.normal(kb, (Cout,), dtype=jnp.float32) * 0.05

    run = jax.jit(functools.partial(conv2d_primary_layer,
                                    out_channels=out_channels, vec_len=vec_len))
    caps = jax.block_until_ready(run(x, w, b))

    ref = _reference(x, w, b, out_channels, vec_len)
    assert caps.shape == (B, out_channels, 4, 4, vec_len), caps.shape
    # Tolerance covers bf16 MXU operands, bf16 output store and the EUP-approx
    # reciprocal vs. the full-f32 reference (errors are O(1e-3) at these scales).
    assert jnp.allclose(caps, ref, atol=2e-2, rtol=2e-2), float(
        jnp.max(jnp.abs(caps - ref)))

    print("KERNEL_OK")
</pallas_src>

<mosaic_0001>
module attributes {stable_mosaic.version = 11 : i64} {
  func.func @kernel(%arg0: i32, %arg1: memref<32x325xbf16, #tpu.memory_space<vmem>>, %arg2: memref<32x32xf32, #tpu.memory_space<vmem>>, %arg3: memref<1x4x4x256xbf16, #tpu.memory_space<vmem>>, %arg4: memref<1x32x128xbf16, #tpu.memory_space<vmem>>, %arg5: memref<325x128xbf16, #tpu.memory_space<vmem>>) attributes {dimension_semantics = [#tpu.dimension_semantics<parallel>], iteration_bounds = array<i64: 2>, scalar_prefetch = 0 : i64, scratch_operands = 1 : i64, tpu.core_type = #tpu.core_type<tc>, window_params = [{pipeline_mode = #tpu.pipeline_mode<synchronous>, transform_indices = @transform_0, window_bounds = array<i64: 32, 325>}, {pipeline_mode = #tpu.pipeline_mode<synchronous>, transform_indices = @transform_1, window_bounds = array<i64: 32, 32>}, {transform_indices = @transform_2, window_bounds = array<i64: 1, 4, 4, 256>}, {transform_indices = @transform_3, window_bounds = array<i64: 1, 32, 128>}]} {
    %c0 = arith.constant 0 : index
    %c0_0 = arith.constant 0 : index
    %c0_1 = arith.constant 0 : index
    %c0_2 = arith.constant 0 : index
    %0 = vector.load %arg3[%c0, %c0_0, %c0_1, %c0_2] : memref<1x4x4x256xbf16, #tpu.memory_space<vmem>>, vector<1x1x4x128xbf16>
    %1 = vector.shape_cast %0 : vector<1x1x4x128xbf16> to vector<4x128xbf16>
    %c0_3 = arith.constant 0 : index
    %c0_4 = arith.constant 0 : index
    %2 = vector.load %arg5[%c0_3, %c0_4] : memref<325x128xbf16, #tpu.memory_space<vmem>>, vector<4x128xbf16>
    tpu.vector_store %arg5[%c0_3, %c0_4], %1 {strides = array<i32>} : memref<325x128xbf16, #tpu.memory_space<vmem>>, vector<4x128xbf16>,
    %c0_5 = arith.constant 0 : index
    %c1 = arith.constant 1 : index
    %c0_6 = arith.constant 0 : index
    %c0_7 = arith.constant 0 : index
    %3 = vector.load %arg3[%c0_5, %c1, %c0_6, %c0_7] : memref<1x4x4x256xbf16, #tpu.memory_space<vmem>>, vector<1x1x4x128xbf16>
    %4 = vector.shape_cast %3 : vector<1x1x4x128xbf16> to vector<4x128xbf16>
    %c4 = arith.constant 4 : index
    %c0_8 = arith.constant 0 : index
    %5 = vector.load %arg5[%c4, %c0_8] : memref<325x128xbf16, #tpu.memory_space<vmem>>, vector<4x128xbf16>
    tpu.vector_store %arg5[%c4, %c0_8], %4 {strides = array<i32>} : memref<325x128xbf16, #tpu.memory_space<vmem>>, vector<4x128xbf16>,
    %c0_9 = arith.constant 0 : index
    %c0_10 = arith.constant 0 : index
    %c0_11 = arith.constant 0 : index
    %c1_12 = arith.constant 1 : index
    %6 = vector.load %arg3[%c0_9, %c0_10, %c0_11, %c1_12] : memref<1x4x4x256xbf16, #tpu.memory_space<vmem>>, vector<1x1x4x128xbf16>
    %7 = vector.shape_cast %6 : vector<1x1x4x128xbf16> to vector<4x128xbf16>
    %c8 = arith.constant 8 : index
    %c0_13 = arith.constant 0 : index
    %8 = vector.load %arg5[%c8, %c0_13] : memref<325x128xbf16, #tpu.memory_space<vmem>>, vector<4x128xbf16>
    tpu.vector_store %arg5[%c8, %c0_13], %7 {strides = array<i32>} : memref<325x128xbf16, #tpu.memory_space<vmem>>, vector<4x128xbf16>,
    %c0_14 = arith.constant 0 : index
    %c1_15 = arith.constant 1 : index
    %c0_16 = arith.constant 0 : index
    %c1_17 = arith.constant 1 : index
    %9 = vector.load %arg3[%c0_14, %c1_15, %c0_16, %c1_17] : memref<1x4x4x256xbf16, #tpu.memory_space<vmem>>, vector<1x1x4x128xbf16>
    %10 = vector.shape_cast %9 : vector<1x1x4x128xbf16> to vector<4x128xbf16>
    %c12 = arith.constant 12 : index
    %c0_18 = arith.constant 0 : index
    %11 = vector.load %arg5[%c12, %c0_18] : memref<325x128xbf16, #tpu.memory_space<vmem>>, vector<4x128xbf16>
    tpu.vector_store %arg5[%c12, %c0_18], %10 {strides = array<i32>} : memref<325x128xbf16, #tpu.memory_space<vmem>>, vector<4x128xbf16>,
    %c0_19 = arith.constant 0 : index
    %c0_20 = arith.constant 0 : index
    %c0_21 = arith.constant 0 : index
    %c2 = arith.constant 2 : index
    %12 = vector.load %arg3[%c0_19, %c0_20, %c0_21, %c2] : memref<1x4x4x256xbf16, #tpu.memory_space<vmem>>, vector<1x1x4x128xbf16>
    %13 = vector.shape_cast %12 : vector<1x1x4x128xbf16> to vector<4x128xbf16>
    %c16 = arith.constant 16 : index
    %c0_22 = arith.constant 0 : index
    %14 = vector.load %arg5[%c16, %c0_22] : memref<325x128xbf16, #tpu.memory_space<vmem>>, vector<4x128xbf16>
    tpu.vector_store %arg5[%c16, %c0_22], %13 {strides = array<i32>} : memref<325x128xbf16, #tpu.memory_space<vmem>>, vector<4x128xbf16>,
    %c0_23 = arith.constant 0 : index
    %c1_24 = arith.constant 1 : index
    %c0_25 = arith.constant 0 : index
    %c2_26 = arith.constant 2 : index
    %15 = vector.load %arg3[%c0_23, %c1_24, %c0_25, %c2_26] : memref<1x4x4x256xbf16, #tpu.memory_space<vmem>>, vector<1x1x4x128xbf16>
    %16 = vector.shape_cast %15 : vector<1x1x4x128xbf16> to vector<4x128xbf16>
    %c20 = arith.constant 20 : index
    %c0_27 = arith.constant 0 : index
    %17 = vector.load %arg5[%c20, %c0_27] : memref<325x128xbf16, #tpu.memory_space<vmem>>, vector<4x128xbf16>
    tpu.vector_store %arg5[%c20, %c0_27], %16 {strides = array<i32>} : memref<325x128xbf16, #tpu.memory_space<vmem>>, vector<4x128xbf16>,
    %c0_28 = arith.constant 0 : index
    %c0_29 = arith.constant 0 : index
    %c0_30 = arith.constant 0 : index
    %c3 = arith.constant 3 : index
    %18 = vector.load %arg3[%c0_28, %c0_29, %c0_30, %c3] : memref<1x4x4x256xbf16, #tpu.memory_space<vmem>>, vector<1x1x4x128xbf16>
    %19 = vector.shape_cast %18 : vector<1x1x4x128xbf16> to vector<4x128xbf16>
    %c24 = arith.constant 24 : index
    %c0_31 = arith.constant 0 : index
    %20 = vector.load %arg5[%c24, %c0_31] : memref<325x128xbf16, #tpu.memory_space<vmem>>, vector<4x128xbf16>
    tpu.vector_store %arg5[%c24, %c0_31], %19 {strides = array<i32>} : memref<325x128xbf16, #tpu.memory_space<vmem>>, vector<4x128xbf16>,
    %c0_32 = arith.constant 0 : index
    %c1_33 = arith.constant 1 : index
    %c0_34 = arith.constant 0 : index
    %c3_35 = arith.constant 3 : index
    %21 = vector.load %arg3[%c0_32, %c1_33, %c0_34, %c3_35] : memref<1x4x4x256xbf16, #tpu.memory_space<vmem>>, vector<1x1x4x128xbf16>
    %22 = vector.shape_cast %21 : vector<1x1x4x128xbf16> to vector<4x128xbf16>
    %c28 = arith.constant 28 : index
    %c0_36 = arith.constant 0 : index
    %23 = vector.load %arg5[%c28, %c0_36] : memref<325x128xbf16, #tpu.memory_space<vmem>>, vector<4x128xbf16>
    tpu.vector_store %arg5[%c28, %c0_36], %22 {strides = array<i32>} : memref<325x128xbf16, #tpu.memory_space<vmem>>, vector<4x128xbf16>,
    %c0_37 = arith.constant 0 : index
    %c0_38 = arith.constant 0 : index
    %c0_39 = arith.constant 0 : index
    %c4_40 = arith.constant 4 : index
    %24 = vector.load %arg3[%c0_37, %c0_38, %c0_39, %c4_40] : memref<1x4x4x256xbf16, #tpu.memory_space<vmem>>, vector<1x1x4x128xbf16>
    %25 = vector.shape_cast %24 : vector<1x1x4x128xbf16> to vector<4x128xbf16>
    %c32 = arith.constant 32 : index
    %c0_41 = arith.constant 0 : index
    %26 = vector.load %arg5[%c32, %c0_41] : memref<325x128xbf16, #tpu.memory_space<vmem>>, vector<4x128xbf16>
    tpu.vector_store %arg5[%c32, %c0_41], %25 {strides = array<i32>} : memref<325x128xbf16, #tpu.memory_space<vmem>>, vector<4x128xbf16>,
    %c0_42 = arith.constant 0 : index
    %c2_43 = arith.constant 2 : index
    %c0_44 = arith.constant 0 : index
    %c0_45 = arith.constant 0 : index
    %27 = vector.load %arg3[%c0_42, %c2_43, %c0_44, %c0_45] : memref<1x4x4x256xbf16, #tpu.memory_space<vmem>>, vector<1x1x4x128xbf16>
    %28 = vector.shape_cast %27 : vector<1x1x4x128xbf16> to vector<4x128xbf16>
    %c36 = arith.constant 36 : index
    %c0_46 = arith.constant 0 : index
    %29 = vector.load %arg5[%c36, %c0_46] : memref<325x128xbf16, #tpu.memory_space<vmem>>, vector<4x128xbf16>
    tpu.vector_store %arg5[%c36, %c0_46], %28 {strides = array<i32>} : memref<325x128xbf16, #tpu.memory_space<vmem>>, vector<4x128xbf16>,
    %c0_47 = arith.constant 0 : index
    %c3_48 = arith.constant 3 : index
    %c0_49 = arith.constant 0 : index
    %c0_50 = arith.constant 0 : index
    %30 = vector.load %arg3[%c0_47, %c3_48, %c0_49, %c0_50] : memref<1x4x4x256xbf16, #tpu.memory_space<vmem>>, vector<1x1x4x128xbf16>
    %31 = vector.shape_cast %30 : vector<1x1x4x128xbf16> to vector<4x128xbf16>
    %c40 = arith.constant 40 : index
    %c0_51 = arith.constant 0 : index
    %32 = vector.load %arg5[%c40, %c0_51] : memref<325x128xbf16, #tpu.memory_space<vmem>>, vector<4x128xbf16>
    tpu.vector_store %arg5[%c40, %c0_51], %31 {strides = array<i32>} : memref<325x128xbf16, #tpu.memory_space<vmem>>, vector<4x128xbf16>,
    %c0_52 = arith.constant 0 : index
    %c2_53 = arith.constant 2 : index
    %c0_54 = arith.constant 0 : index
    %c1_55 = arith.constant 1 : index
    %33 = vector.load %arg3[%c0_52, %c2_53, %c0_54, %c1_55] : memref<1x4x4x256xbf16, #tpu.memory_space<vmem>>, vector<1x1x4x128xbf16>
    %34 = vector.shape_cast %33 : vector<1x1x4x128xbf16> to vector<4x128xbf16>
    %c44 = arith.constant 44 : index
    %c0_56 = arith.constant 0 : index
    %35 = vector.load %arg5[%c44, %c0_56] : memref<325x128xbf16, #tpu.memory_space<vmem>>, vector<4x128xbf16>
    tpu.vector_store %arg5[%c44, %c0_56], %34 {strides = array<i32>} : memref<325x128xbf16, #tpu.memory_space<vmem>>, vector<4x128xbf16>,
    %c0_57 = arith.constant 0 : index
    %c3_58 = arith.constant 3 : index
    %c0_59 = arith.constant 0 : index
    %c1_60 = arith.constant 1 : index
    %36 = vector.load %arg3[%c0_57, %c3_58, %c0_59, %c1_60] : memref<1x4x4x256xbf16, #tpu.memory_space<vmem>>, vector<1x1x4x128xbf16>
    %37 = vector.shape_cast %36 : vector<1x1x4x128xbf16> to vector<4x128xbf16>
    %c48 = arith.constant 48 : index
    %c0_61 = arith.constant 0 : index
    %38 = vector.load %arg5[%c48, %c0_61] : memref<325x128xbf16, #tpu.memory_space<vmem>>, vector<4x128xbf16>
    tpu.vector_store %arg5[%c48, %c0_61], %37 {strides = array<i32>} : memref<325x128xbf16, #tpu.memory_space<vmem>>, vector<4x128xbf16>,
    %c0_62 = arith.constant 0 : index
    %c2_63 = arith.constant 2 : index
    %c0_64 = arith.constant 0 : index
    %c2_65 = arith.constant 2 : index
    %39 = vector.load %arg3[%c0_62, %c2_63, %c0_64, %c2_65] : memref<1x4x4x256xbf16, #tpu.memory_space<vmem>>, vector<1x1x4x128xbf16>
    %40 = vector.shape_cast %39 : vector<1x1x4x128xbf16> to vector<4x128xbf16>
    %c52 = arith.constant 52 : index
    %c0_66 = arith.constant 0 : index
    %41 = vector.load %arg5[%c52, %c0_66] : memref<325x128xbf16, #tpu.memory_space<vmem>>, vector<4x128xbf16>
    tpu.vector_store %arg5[%c52, %c0_66], %40 {strides = array<i32>} : memref<325x128xbf16, #tpu.memory_space<vmem>>, vector<4x128xbf16>,
    %c0_67 = arith.constant 0 : index
    %c3_68 = arith.constant 3 : index
    %c0_69 = arith.constant 0 : index
    %c2_70 = arith.constant 2 : index
    %42 = vector.load %arg3[%c0_67, %c3_68, %c0_69, %c2_70] : memref<1x4x4x256xbf16, #tpu.memory_space<vmem>>, vector<1x1x4x128xbf16>
    %43 = vector.shape_cast %42 : vector<1x1x4x128xbf16> to vector<4x128xbf16>
    %c56 = arith.constant 56 : index
    %c0_71 = arith.constant 0 : index
    %44 = vector.load %arg5[%c56, %c0_71] : memref<325x128xbf16, #tpu.memory_space<vmem>>, vector<4x128xbf16>
    tpu.vector_store %arg5[%c56, %c0_71], %43 {strides = array<i32>} : memref<325x128xbf16, #tpu.memory_space<vmem>>, vector<4x128xbf16>,
    %c0_72 = arith.constant 0 : index
    %c2_73 = arith.constant 2 : index
    %c0_74 = arith.constant 0 : index
    %c3_75 = arith.constant 3 : index
    %45 = vector.load %arg3[%c0_72, %c2_73, %c0_74, %c3_75] : memref<1x4x4x256xbf16, #tpu.memory_space<vmem>>, vector<1x1x4x128xbf16>
    %46 = vector.shape_cast %45 : vector<1x1x4x128xbf16> to vector<4x128xbf16>
    %c60 = arith.constant 60 : index
    %c0_76 = arith.constant 0 : index
    %47 = vector.load %arg5[%c60, %c0_76] : memref<325x128xbf16, #tpu.memory_space<vmem>>, vector<4x128xbf16>
    tpu.vector_store %arg5[%c60, %c0_76], %46 {strides = array<i32>} : memref<325x128xbf16, #tpu.memory_space<vmem>>, vector<4x128xbf16>,
    %c0_77 = arith.constant 0 : index
    %c3_78 = arith.constant 3 : index
    %c0_79 = arith.constant 0 : index
    %c3_80 = arith.constant 3 : index
    %48 = vector.load %arg3[%c0_77, %c3_78, %c0_79, %c3_80] : memref<1x4x4x256xbf16, #tpu.memory_space<vmem>>, vector<1x1x4x128xbf16>
    %49 = vector.shape_cast %48 : vector<1x1x4x128xbf16> to vector<4x128xbf16>
    %c64 = arith.constant 64 : index
    %c0_81 = arith.constant 0 : index
    %50 = vector.load %arg5[%c64, %c0_81] : memref<325x128xbf16, #tpu.memory_space<vmem>>, vector<4x128xbf16>
    tpu.vector_store %arg5[%c64, %c0_81], %49 {strides = array<i32>} : memref<325x128xbf16, #tpu.memory_space<vmem>>, vector<4x128xbf16>,
    %c0_82 = arith.constant 0 : index
    %c2_83 = arith.constant 2 : index
    %c0_84 = arith.constant 0 : index
    %c4_85 = arith.constant 4 : index
    %51 = vector.load %arg3[%c0_82, %c2_83, %c0_84, %c4_85] : memref<1x4x4x256xbf16, #tpu.memory_space<vmem>>, vector<1x1x4x128xbf16>
    %52 = vector.shape_cast %51 : vector<1x1x4x128xbf16> to vector<4x128xbf16>
    %c68 = arith.constant 68 : index
    %c0_86 = arith.constant 0 : index
    %53 = vector.load %arg5[%c68, %c0_86] : memref<325x128xbf16, #tpu.memory_space<vmem>>, vector<4x128xbf16>
    tpu.vector_store %arg5[%c68, %c0_86], %52 {strides = array<i32>} : memref<325x128xbf16, #tpu.memory_space<vmem>>, vector<4x128xbf16>,
    %c0_87 = arith.constant 0 : index
    %c0_88 = arith.constant 0 : index
    %c0_89 = arith.constant 0 : index
    %c8_90 = arith.constant 8 : index
    %54 = vector.load %arg3[%c0_87, %c0_88, %c0_89, %c8_90] : memref<1x4x4x256xbf16, #tpu.memory_space<vmem>>, vector<1x1x4x128xbf16>
    %55 = vector.shape_cast %54 : vector<1x1x4x128xbf16> to vector<4x128xbf16>
    %c72 = arith.constant 72 : index
    %c0_91 = arith.constant 0 : index
    %56 = vector.load %arg5[%c72, %c0_91] : memref<325x128xbf16, #tpu.memory_space<vmem>>, vector<4x128xbf16>
    tpu.vector_store %arg5[%c72, %c0_91], %55 {strides = array<i32>} : memref<325x128xbf16, #tpu.memory_space<vmem>>, vector<4x128xbf16>,
    %c0_92 = arith.constant 0 : index
    %c1_93 = arith.constant 1 : index
    %c0_94 = arith.constant 0 : index
    %c8_95 = arith.constant 8 : index
    %57 = vector.load %arg3[%c0_92, %c1_93, %c0_94, %c8_95] : memref<1x4x4x256xbf16, #tpu.memory_space<vmem>>, vector<1x1x4x128xbf16>
    %58 = vector.shape_cast %57 : vector<1x1x4x128xbf16> to vector<4x128xbf16>
    %c76 = arith.constant 76 : index
    %c0_96 = arith.constant 0 : index
    %59 = vector.load %arg5[%c76, %c0_96] : memref<325x128xbf16, #tpu.memory_space<vmem>>, vector<4x128xbf16>
    tpu.vector_store %arg5[%c76, %c0_96], %58 {strides = array<i32>} : memref<325x128xbf16, #tpu.memory_space<vmem>>, vector<4x128xbf16>,
    %c0_97 = arith.constant 0 : index
    %c0_98 = arith.constant 0 : index
    %c0_99 = arith.constant 0 : index
    %c9 = arith.constant 9 : index
    %60 = vector.load %arg3[%c0_97, %c0_98, %c0_99, %c9] : memref<1x4x4x256xbf16, #tpu.memory_space<vmem>>, vector<1x1x4x128xbf16>
    %61 = vector.shape_cast %60 : vector<1x1x4x128xbf16> to vector<4x128xbf16>
    %c80 = arith.constant 80 : index
    %c0_100 = arith.constant 0 : index
    %62 = vector.load %arg5[%c80, %c0_100] : memref<325x128xbf16, #tpu.memory_space<vmem>>, vector<4x128xbf16>
    tpu.vector_store %arg5[%c80, %c0_100], %61 {strides = array<i32>} : memref<325x128xbf16, #tpu.memory_space<vmem>>, vector<4x128xbf16>,
    %c0_101 = arith.constant 0 : index
    %c1_102 = arith.constant 1 : index
    %c0_103 = arith.constant 0 : index
    %c9_104 = arith.constant 9 : index
    %63 = vector.load %arg3[%c0_101, %c1_102, %c0_103, %c9_104] : memref<1x4x4x256xbf16, #tpu.memory_space<vmem>>, vector<1x1x4x128xbf16>
    %64 = vector.shape_cast %63 : vector<1x1x4x128xbf16> to vector<4x128xbf16>
    %c84 = arith.constant 84 : index
    %c0_105 = arith.constant 0 : index
    %65 = vector.load %arg5[%c84, %c0_105] : memref<325x128xbf16, #tpu.memory_space<vmem>>, vector<4x128xbf16>
    tpu.vector_store %arg5[%c84, %c0_105], %64 {strides = array<i32>} : memref<325x128xbf16, #tpu.memory_space<vmem>>, vector<4x128xbf16>,
    %c0_106 = arith.constant 0 : index
    %c0_107 = arith.constant 0 : index
    %c0_108 = arith.constant 0 : index
    %c10 = arith.constant 10 : index
    %66 = vector.load %arg3[%c0_106, %c0_107, %c0_108, %c10] : memref<1x4x4x256xbf16, #tpu.memory_space<vmem>>, vector<1x1x4x128xbf16>
    %67 = vector.shape_cast %66 : vector<1x1x4x128xbf16> to vector<4x128xbf16>
    %c88 = arith.constant 88 : index
    %c0_109 = arith.constant 0 : index
    %68 = vector.load %arg5[%c88, %c0_109] : memref<325x128xbf16, #tpu.memory_space<vmem>>, vector<4x128xbf16>
    tpu.vector_store %arg5[%c88, %c0_109], %67 {strides = array<i32>} : memref<325x128xbf16, #tpu.memory_space<vmem>>, vector<4x128xbf16>,
    %c0_110 = arith.constant 0 : index
    %c1_111 = arith.constant 1 : index
    %c0_112 = arith.constant 0 : index
    %c10_113 = arith.constant 10 : index
    %69 = vector.load %arg3[%c0_110, %c1_111, %c0_112, %c10_113] : memref<1x4x4x256xbf16, #tpu.memory_space<vmem>>, vector<1x1x4x128xbf16>
    %70 = vector.shape_cast %69 : vector<1x1x4x128xbf16> to vector<4x128xbf16>
    %c92 = arith.constant 92 : index
    %c0_114 = arith.constant 0 : index
    %71 = vector.load %arg5[%c92, %c0_114] : memref<325x128xbf16, #tpu.memory_space<vmem>>, vector<4x128xbf16>
    tpu.vector_store %arg5[%c92, %c0_114], %70 {strides = array<i32>} : memref<325x128xbf16, #tpu.memory_space<vmem>>, vector<4x128xbf16>,
    %c0_115 = arith.constant 0 : index
    %c0_116 = arith.constant 0 : index
    %c0_117 = arith.constant 0 : index
    %c11 = arith.constant 11 : index
    %72 = vector.load %arg3[%c0_115, %c0_116, %c0_117, %c11] : memref<1x4x4x256xbf16, #tpu.memory_space<vmem>>, vector<1x1x4x128xbf16>
    %73 = vector.shape_cast %72 : vector<1x1x4x128xbf16> to vector<4x128xbf16>
    %c96 = arith.constant 96 : index
    %c0_118 = arith.constant 0 : index
    %74 = vector.load %arg5[%c96, %c0_118] : memref<325x128xbf16, #tpu.memory_space<vmem>>, vector<4x128xbf16>
    tpu.vector_store %arg5[%c96, %c0_118], %73 {strides = array<i32>} : memref<325x128xbf16, #tpu.memory_space<vmem>>, vector<4x128xbf16>,
    %c0_119 = arith.constant 0 : index
    %c1_120 = arith.constant 1 : index
    %c0_121 = arith.constant 0 : index
    %c11_122 = arith.constant 11 : index
    %75 = vector.load %arg3[%c0_119, %c1_120, %c0_121, %c11_122] : memref<1x4x4x256xbf16, #tpu.memory_space<vmem>>, vector<1x1x4x128xbf16>
    %76 = vector.shape_cast %75 : vector<1x1x4x128xbf16> to vector<4x128xbf16>
    %c100 = arith.constant 100 : index
    %c0_123 = arith.constant 0 : index
    %77 = vector.load %arg5[%c100, %c0_123] : memref<325x128xbf16, #tpu.memory_space<vmem>>, vector<4x128xbf16>
    tpu.vector_store %arg5[%c100, %c0_123], %76 {strides = array<i32>} : memref<325x128xbf16, #tpu.memory_space<vmem>>, vector<4x128xbf16>,
    %c0_124 = arith.constant 0 : index
    %c0_125 = arith.constant 0 : index
    %c0_126 = arith.constant 0 : index
    %c12_127 = arith.constant 12 : index
    %78 = vector.load %arg3[%c0_124, %c0_125, %c0_126, %c12_127] : memref<1x4x4x256xbf16, #tpu.memory_space<vmem>>, vector<1x1x4x128xbf16>
    %79 = vector.shape_cast %78 : vector<1x1x4x128xbf16> to vector<4x128xbf16>
    %c104 = arith.constant 104 : index
    %c0_128 = arith.constant 0 : index
    %80 = vector.load %arg5[%c104, %c0_128] : memref<325x128xbf16, #tpu.memory_space<vmem>>, vector<4x128xbf16>
    tpu.vector_store %arg5[%c104, %c0_128], %79 {strides = array<i32>} : memref<325x128xbf16, #tpu.memory_space<vmem>>, vector<4x128xbf16>,
    %c0_129 = arith.constant 0 : index
    %c2_130 = arith.constant 2 : index
    %c0_131 = arith.constant 0 : index
    %c8_132 = arith.constant 8 : index
    %81 = vector.load %arg3[%c0_129, %c2_130, %c0_131, %c8_132] : memref<1x4x4x256xbf16, #tpu.memory_space<vmem>>, vector<1x1x4x128xbf16>
    %82 = vector.shape_cast %81 : vector<1x1x4x128xbf16> to vector<4x128xbf16>
    %c108 = arith.constant 108 : index
    %c0_133 = arith.constant 0 : index
    %83 = vector.load %arg5[%c108, %c0_133] : memref<325x128xbf16, #tpu.memory_space<vmem>>, vector<4x128xbf16>
    tpu.vector_store %arg5[%c108, %c0_133], %82 {strides = array<i32>} : memref<325x128xbf16, #tpu.memory_space<vmem>>, vector<4x128xbf16>,
    %c0_134 = arith.constant 0 : index
    %c3_135 = arith.constant 3 : index
    %c0_136 = arith.constant 0 : index
    %c8_137 = arith.constant 8 : index
    %84 = vector.load %arg3[%c0_134, %c3_135, %c0_136, %c8_137] : memref<1x4x4x256xbf16, #tpu.memory_space<vmem>>, vector<1x1x4x128xbf16>
    %85 = vector.shape_cast %84 : vector<1x1x4x128xbf16> to vector<4x128xbf16>
    %c112 = arith.constant 112 : index
    %c0_138 = arith.constant 0 : index
    %86 = vector.load %arg5[%c112, %c0_138] : memref<325x128xbf16, #tpu.memory_space<vmem>>, vector<4x128xbf16>
    tpu.vector_store %arg5[%c112, %c0_138], %85 {strides = array<i32>} : memref<325x128xbf16, #tpu.memory_space<vmem>>, vector<4x128xbf16>,
    %c0_139 = arith.constant 0 : index
    %c2_140 = arith.constant 2 : index
    %c0_141 = arith.constant 0 : index
    %c9_142 = arith.constant 9 : index
    %87 = vector.load %arg3[%c0_139, %c2_140, %c0_141, %c9_142] : memref<1x4x4x256xbf16, #tpu.memory_space<vmem>>, vector<1x1x4x128xbf16>
    %88 = vector.shape_cast %87 : vector<1x1x4x128xbf16> to vector<4x128xbf16>
    %c116 = arith.constant 116 : index
    %c0_143 = arith.constant 0 : index
    %89 = vector.load %arg5[%c116, %c0_143] : memref<325x128xbf16, #tpu.memory_space<vmem>>, vector<4x128xbf16>
    tpu.vector_store %arg5[%c116, %c0_143], %88 {strides = array<i32>} : memref<325x128xbf16, #tpu.memory_space<vmem>>, vector<4x128xbf16>,
    %c0_144 = arith.constant 0 : index
    %c3_145 = arith.constant 3 : index
    %c0_146 = arith.constant 0 : index
    %c9_147 = arith.constant 9 : index
    %90 = vector.load %arg3[%c0_144, %c3_145, %c0_146, %c9_147] : memref<1x4x4x256xbf16, #tpu.memory_space<vmem>>, vector<1x1x4x128xbf16>
    %91 = vector.shape_cast %90 : vector<1x1x4x128xbf16> to vector<4x128xbf16>
    %c120 = arith.constant 120 : index
    %c0_148 = arith.constant 0 : index
    %92 = vector.load %arg5[%c120, %c0_148] : memref<325x128xbf16, #tpu.memory_space<vmem>>, vector<4x128xbf16>
    tpu.vector_store %arg5[%c120, %c0_148], %91 {strides = array<i32>} : memref<325x128xbf16, #tpu.memory_space<vmem>>, vector<4x128xbf16>,
    %c0_149 = arith.constant 0 : index
    %c2_150 = arith.constant 2 : index
    %c0_151 = arith.constant 0 : index
    %c10_152 = arith.constant 10 : index
    %93 = vector.load %arg3[%c0_149, %c2_150, %c0_151, %c10_152] : memref<1x4x4x256xbf16, #tpu.memory_space<vmem>>, vector<1x1x4x128xbf16>
    %94 = vector.shape_cast %93 : vector<1x1x4x128xbf16> to vector<4x128xbf16>
    %c124 = arith.constant 124 : index
    %c0_153 = arith.constant 0 : index
    %95 = vector.load %arg5[%c124, %c0_153] : memref<325x128xbf16, #tpu.memory_space<vmem>>, vector<4x128xbf16>
    tpu.vector_store %arg5[%c124, %c0_153], %94 {strides = array<i32>} : memref<325x128xbf16, #tpu.memory_space<vmem>>, vector<4x128xbf16>,
    %c0_154 = arith.constant 0 : index
    %c3_155 = arith.constant 3 : index
    %c0_156 = arith.constant 0 : index
    %c10_157 = arith.constant 10 : index
    %96 = vector.load %arg3[%c0_154, %c3_155, %c0_156, %c10_157] : memref<1x4x4x256xbf16, #tpu.memory_space<vmem>>, vector<1x1x4x128xbf16>
    %97 = vector.shape_cast %96 : vector<1x1x4x128xbf16> to vector<4x128xbf16>
    %c128 = arith.constant 128 : index
    %c0_158 = arith.constant 0 : index
    %98 = vector.load %arg5[%c128, %c0_158] : memref<325x128xbf16, #tpu.memory_space<vmem>>, vector<4x128xbf16>
    tpu.vector_store %arg5[%c128, %c0_158], %97 {strides = array<i32>} : memref<325x128xbf16, #tpu.memory_space<vmem>>, vector<4x128xbf16>,
    %c0_159 = arith.constant 0 : index
    %c2_160 = arith.constant 2 : index
    %c0_161 = arith.constant 0 : index
    %c11_162 = arith.constant 11 : index
    %99 = vector.load %arg3[%c0_159, %c2_160, %c0_161, %c11_162] : memref<1x4x4x256xbf16, #tpu.memory_space<vmem>>, vector<1x1x4x128xbf16>
    %100 = vector.shape_cast %99 : vector<1x1x4x128xbf16> to vector<4x128xbf16>
    %c132 = arith.constant 132 : index
    %c0_163 = arith.constant 0 : index
    %101 = vector.load %arg5[%c132, %c0_163] : memref<325x128xbf16, #tpu.memory_space<vmem>>, vector<4x128xbf16>
    tpu.vector_store %arg5[%c132, %c0_163], %100 {strides = array<i32>} : memref<325x128xbf16, #tpu.memory_space<vmem>>, vector<4x128xbf16>,
    %c0_164 = arith.constant 0 : index
    %c3_165 = arith.constant 3 : index
    %c0_166 = arith.constant 0 : index
    %c11_167 = arith.constant 11 : index
    %102 = vector.load %arg3[%c0_164, %c3_165, %c0_166, %c11_167] : memref<1x4x4x256xbf16, #tpu.memory_space<vmem>>, vector<1x1x4x128xbf16>
    %103 = vector.shape_cast %102 : vector<1x1x4x128xbf16> to vector<4x128xbf16>
    %c136 = arith.constant 136 : index
    %c0_168 = arith.constant 0 : index
    %104 = vector.load %arg5[%c136, %c0_168] : memref<325x128xbf16, #tpu.memory_space<vmem>>, vector<4x128xbf16>
    tpu.vector_store %arg5[%c136, %c0_168], %103 {strides = array<i32>} : memref<325x128xbf16, #tpu.memory_space<vmem>>, vector<4x128xbf16>,
    %c0_169 = arith.constant 0 : index
    %c2_170 = arith.constant 2 : index
    %c0_171 = arith.constant 0 : index
    %c12_172 = arith.constant 12 : index
    %105 = vector.load %arg3[%c0_169, %c2_170, %c0_171, %c12_172] : memref<1x4x4x256xbf16, #tpu.memory_space<vmem>>, vector<1x1x4x128xbf16>
    %106 = vector.shape_cast %105 : vector<1x1x4x128xbf16> to vector<4x128xbf16>
    %c140 = arith.constant 140 : index
    %c0_173 = arith.constant 0 : index
    %107 = vector.load %arg5[%c140, %c0_173] : memref<325x128xbf16, #tpu.memory_space<vmem>>, vector<4x128xbf16>
    tpu.vector_store %arg5[%c140, %c0_173], %106 {strides = array<i32>} : memref<325x128xbf16, #tpu.memory_space<vmem>>, vector<4x128xbf16>,
    %c0_174 = arith.constant 0 : index
    %c0_175 = arith.constant 0 : index
    %c0_176 = arith.constant 0 : index
    %c16_177 = arith.constant 16 : index
    %108 = vector.load %arg3[%c0_174, %c0_175, %c0_176, %c16_177] : memref<1x4x4x256xbf16, #tpu.memory_space<vmem>>, vector<1x1x4x128xbf16>
    %109 = vector.shape_cast %108 : vector<1x1x4x128xbf16> to vector<4x128xbf16>
    %c144 = arith.constant 144 : index
    %c0_178 = arith.constant 0 : index
    %110 = vector.load %arg5[%c144, %c0_178] : memref<325x128xbf16, #tpu.memory_space<vmem>>, vector<4x128xbf16>
    tpu.vector_store %arg5[%c144, %c0_178], %109 {strides = array<i32>} : memref<325x128xbf16, #tpu.memory_space<vmem>>, vector<4x128xbf16>,
    %c0_179 = arith.constant 0 : index
    %c1_180 = arith.constant 1 : index
    %c0_181 = arith.constant 0 : index
    %c16_182 = arith.constant 16 : index
    %111 = vector.load %arg3[%c0_179, %c1_180, %c0_181, %c16_182] : memref<1x4x4x256xbf16, #tpu.memory_space<vmem>>, vector<1x1x4x128xbf16>
    %112 = vector.shape_cast %111 : vector<1x1x4x128xbf16> to vector<4x128xbf16>
    %c148 = arith.constant 148 : index
    %c0_183 = arith.constant 0 : index
    %113 = vector.load %arg5[%c148, %c0_183] : memref<325x128xbf16, #tpu.memory_space<vmem>>, vector<4x128xbf16>
    tpu.vector_store %arg5[%c148, %c0_183], %112 {strides = array<i32>} : memref<325x128xbf16, #tpu.memory_space<vmem>>, vector<4x128xbf16>,
    %c0_184 = arith.constant 0 : index
    %c0_185 = arith.constant 0 : index
    %c0_186 = arith.constant 0 : index
    %c17 = arith.constant 17 : index
    %114 = vector.load %arg3[%c0_184, %c0_185, %c0_186, %c17] : memref<1x4x4x256xbf16, #tpu.memory_space<vmem>>, vector<1x1x4x128xbf16>
    %115 = vector.shape_cast %114 : vector<1x1x4x128xbf16> to vector<4x128xbf16>
    %c152 = arith.constant 152 : index
    %c0_187 = arith.constant 0 : index
    %116 = vector.load %arg5[%c152, %c0_187] : memref<325x128xbf16, #tpu.memory_space<vmem>>, vector<4x128xbf16>
    tpu.vector_store %arg5[%c152, %c0_187], %115 {strides = array<i32>} : memref<325x128xbf16, #tpu.memory_space<vmem>>, vector<4x128xbf16>,
    %c0_188 = arith.constant 0 : index
    %c1_189 = arith.constant 1 : index
    %c0_190 = arith.constant 0 : index
    %c17_191 = arith.constant 17 : index
    %117 = vector.load %arg3[%c0_188, %c1_189, %c0_190, %c17_191] : memref<1x4x4x256xbf16, #tpu.memory_space<vmem>>, vector<1x1x4x128xbf16>
    %118 = vector.shape_cast %117 : vector<1x1x4x128xbf16> to vector<4x128xbf16>
    %c156 = arith.constant 156 : index
    %c0_192 = arith.constant 0 : index
    %119 = vector.load %arg5[%c156, %c0_192] : memref<325x128xbf16, #tpu.memory_space<vmem>>, vector<4x128xbf16>
    tpu.vector_store %arg5[%c156, %c0_192], %118 {strides = array<i32>} : memref<325x128xbf16, #tpu.memory_space<vmem>>, vector<4x128xbf16>,
    %c0_193 = arith.constant 0 : index
    %c0_194 = arith.constant 0 : index
    %c0_195 = arith.constant 0 : index
    %c18 = arith.constant 18 : index
    %120 = vector.load %arg3[%c0_193, %c0_194, %c0_195, %c18] : memref<1x4x4x256xbf16, #tpu.memory_space<vmem>>, vector<1x1x4x128xbf16>
    %121 = vector.shape_cast %120 : vector<1x1x4x128xbf16> to vector<4x128xbf16>
    %c160 = arith.constant 160 : index
    %c0_196 = arith.constant 0 : index
    %122 = vector.load %arg5[%c160, %c0_196] : memref<325x128xbf16, #tpu.memory_space<vmem>>, vector<4x128xbf16>
    tpu.vector_store %arg5[%c160, %c0_196], %121 {strides = array<i32>} : memref<325x128xbf16, #tpu.memory_space<vmem>>, vector<4x128xbf16>,
    %c0_197 = arith.constant 0 : index
    %c1_198 = arith.constant 1 : index
    %c0_199 = arith.constant 0 : index
    %c18_200 = arith.constant 18 : index
    %123 = vector.load %arg3[%c0_197, %c1_198, %c0_199, %c18_200] : memref<1x4x4x256xbf16, #tpu.memory_space<vmem>>, vector<1x1x4x128xbf16>
    %124 = vector.shape_cast %123 : vector<1x1x4x128xbf16> to vector<4x128xbf16>
    %c164 = arith.constant 164 : index
    %c0_201 = arith.constant 0 : index
    %125 = vector.load %arg5[%c164, %c0_201] : memref<325x128xbf16, #tpu.memory_space<vmem>>, vector<4x128xbf16>
    tpu.vector_store %arg5[%c164, %c0_201], %124 {strides = array<i32>} : memref<325x128xbf16, #tpu.memory_space<vmem>>, vector<4x128xbf16>,
    %c0_202 = arith.constant 0 : index
    %c0_203 = arith.constant 0 : index
    %c0_204 = arith.constant 0 : index
    %c19 = arith.constant 19 : index
    %126 = vector.load %arg3[%c0_202, %c0_203, %c0_204, %c19] : memref<1x4x4x256xbf16, #tpu.memory_space<vmem>>, vector<1x1x4x128xbf16>
    %127 = vector.shape_cast %126 : vector<1x1x4x128xbf16> to vector<4x128xbf16>
    %c168 = arith.constant 168 : index
    %c0_205 = arith.constant 0 : index
    %128 = vector.load %arg5[%c168, %c0_205] : memref<325x128xbf16, #tpu.memory_space<vmem>>, vector<4x128xbf16>
    tpu.vector_store %arg5[%c168, %c0_205], %127 {strides = array<i32>} : memref<325x128xbf16, #tpu.memory_space<vmem>>, vector<4x128xbf16>,
    %c0_206 = arith.constant 0 : index
    %c1_207 = arith.constant 1 : index
    %c0_208 = arith.constant 0 : index
    %c19_209 = arith.constant 19 : index
    %129 = vector.load %arg3[%c0_206, %c1_207, %c0_208, %c19_209] : memref<1x4x4x256xbf16, #tpu.memory_space<vmem>>, vector<1x1x4x128xbf16>
    %130 = vector.shape_cast %129 : vector<1x1x4x128xbf16> to vector<4x128xbf16>
    %c172 = arith.constant 172 : index
    %c0_210 = arith.constant 0 : index
    %131 = vector.load %arg5[%c172, %c0_210] : memref<325x128xbf16, #tpu.memory_space<vmem>>, vector<4x128xbf16>
    tpu.vector_store %arg5[%c172, %c0_210], %130 {strides = array<i32>} : memref<325x128xbf16, #tpu.memory_space<vmem>>, vector<4x128xbf16>,
    %c0_211 = arith.constant 0 : index
    %c0_212 = arith.constant 0 : index
    %c0_213 = arith.constant 0 : index
    %c20_214 = arith.constant 20 : index
    %132 = vector.load %arg3[%c0_211, %c0_212, %c0_213, %c20_214] : memref<1x4x4x256xbf16, #tpu.memory_space<vmem>>, vector<1x1x4x128xbf16>
    %133 = vector.shape_cast %132 : vector<1x1x4x128xbf16> to vector<4x128xbf16>
    %c176 = arith.constant 176 : index
    %c0_215 = arith.constant 0 : index
    %134 = vector.load %arg5[%c176, %c0_215] : memref<325x128xbf16, #tpu.memory_space<vmem>>, vector<4x128xbf16>
    tpu.vector_store %arg5[%c176, %c0_215], %133 {strides = array<i32>} : memref<325x128xbf16, #tpu.memory_space<vmem>>, vector<4x128xbf16>,
    %c0_216 = arith.constant 0 : index
    %c2_217 = arith.constant 2 : index
    %c0_218 = arith.constant 0 : index
    %c16_219 = arith.constant 16 : index
    %135 = vector.load %arg3[%c0_216, %c2_217, %c0_218, %c16_219] : memref<1x4x4x256xbf16, #tpu.memory_space<vmem>>, vector<1x1x4x128xbf16>
    %136 = vector.shape_cast %135 : vector<1x1x4x128xbf16> to vector<4x128xbf16>
    %c180 = arith.constant 180 : index
    %c0_220 = arith.constant 0 : index
    %137 = vector.load %arg5[%c180, %c0_220] : memref<325x128xbf16, #tpu.memory_space<vmem>>, vector<4x128xbf16>
    tpu.vector_store %arg5[%c180, %c0_220], %136 {strides = array<i32>} : memref<325x128xbf16, #tpu.memory_space<vmem>>, vector<4x128xbf16>,
    %c0_221 = arith.constant 0 : index
    %c3_222 = arith.constant 3 : index
    %c0_223 = arith.constant 0 : index
    %c16_224 = arith.constant 16 : index
    %138 = vector.load %arg3[%c0_221, %c3_222, %c0_223, %c16_224] : memref<1x4x4x256xbf16, #tpu.memory_space<vmem>>, vector<1x1x4x128xbf16>
    %139 = vector.shape_cast %138 : vector<1x1x4x128xbf16> to vector<4x128xbf16>
    %c184 = arith.constant 184 : index
    %c0_225 = arith.constant 0 : index
    %140 = vector.load %arg5[%c184, %c0_225] : memref<325x128xbf16, #tpu.memory_space<vmem>>, vector<4x128xbf16>
    tpu.vector_store %arg5[%c184, %c0_225], %139 {strides = array<i32>} : memref<325x128xbf16, #tpu.memory_space<vmem>>, vector<4x128xbf16>,
    %c0_226 = arith.constant 0 : index
    %c2_227 = arith.constant 2 : index
    %c0_228 = arith.constant 0 : index
    %c17_229 = arith.constant 17 : index
    %141 = vector.load %arg3[%c0_226, %c2_227, %c0_228, %c17_229] : memref<1x4x4x256xbf16, #tpu.memory_space<vmem>>, vector<1x1x4x128xbf16>
    %142 = vector.shape_cast %141 : vector<1x1x4x128xbf16> to vector<4x128xbf16>
    %c188 = arith.constant 188 : index
    %c0_230 = arith.constant 0 : index
    %143 = vector.load %arg5[%c188, %c0_230] : memref<325x128xbf16, #tpu.memory_space<vmem>>, vector<4x128xbf16>
    tpu.vector_store %arg5[%c188, %c0_230], %142 {strides = array<i32>} : memref<325x128xbf16, #tpu.memory_space<vmem>>, vector<4x128xbf16>,
    %c0_231 = arith.constant 0 : index
    %c3_232 = arith.constant 3 : index
    %c0_233 = arith.constant 0 : index
    %c17_234 = arith.constant 17 : index
    %144 = vector.load %arg3[%c0_231, %c3_232, %c0_233, %c17_234] : memref<1x4x4x256xbf16, #tpu.memory_space<vmem>>, vector<1x1x4x128xbf16>
    %145 = vector.shape_cast %144 : vector<1x1x4x128xbf16> to vector<4x128xbf16>
    %c192 = arith.constant 192 : index
    %c0_235 = arith.constant 0 : index
    %146 = vector.load %arg5[%c192, %c0_235] : memref<325x128xbf16, #tpu.memory_space<vmem>>, vector<4x128xbf16>
    tpu.vector_store %arg5[%c192, %c0_235], %145 {strides = array<i32>} : memref<325x128xbf16, #tpu.memory_space<vmem>>, vector<4x128xbf16>,
    %c0_236 = arith.constant 0 : index
    %c2_237 = arith.constant 2 : index
    %c0_238 = arith.constant 0 : index
    %c18_239 = arith.constant 18 : index
    %147 = vector.load %arg3[%c0_236, %c2_237, %c0_238, %c18_239] : memref<1x4x4x256xbf16, #tpu.memory_space<vmem>>, vector<1x1x4x128xbf16>
    %148 = vector.shape_cast %147 : vector<1x1x4x128xbf16> to vector<4x128xbf16>
    %c196 = arith.constant 196 : index
    %c0_240 = arith.constant 0 : index
    %149 = vector.load %arg5[%c196, %c0_240] : memref<325x128xbf16, #tpu.memory_space<vmem>>, vector<4x128xbf16>
    tpu.vector_store %arg5[%c196, %c0_240], %148 {strides = array<i32>} : memref<325x128xbf16, #tpu.memory_space<vmem>>, vector<4x128xbf16>,
    %c0_241 = arith.constant 0 : index
    %c3_242 = arith.constant 3 : index
    %c0_243 = arith.constant 0 : index
    %c18_244 = arith.constant 18 : index
    %150 = vector.load %arg3[%c0_241, %c3_242, %c0_243, %c18_244] : memref<1x4x4x256xbf16, #tpu.memory_space<vmem>>, vector<1x1x4x128xbf16>
    %151 = vector.shape_cast %150 : vector<1x1x4x128xbf16> to vector<4x128xbf16>
    %c200 = arith.constant 200 : index
    %c0_245 = arith.constant 0 : index
    %152 = vector.load %arg5[%c200, %c0_245] : memref<325x128xbf16, #tpu.memory_space<vmem>>, vector<4x128xbf16>
    tpu.vector_store %arg5[%c200, %c0_245], %151 {strides = array<i32>} : memref<325x128xbf16, #tpu.memory_space<vmem>>, vector<4x128xbf16>,
    %c0_246 = arith.constant 0 : index
    %c2_247 = arith.constant 2 : index
    %c0_248 = arith.constant 0 : index
    %c19_249 = arith.constant 19 : index
    %153 = vector.load %arg3[%c0_246, %c2_247, %c0_248, %c19_249] : memref<1x4x4x256xbf16, #tpu.memory_space<vmem>>, vector<1x1x4x128xbf16>
    %154 = vector.shape_cast %153 : vector<1x1x4x128xbf16> to vector<4x128xbf16>
    %c204 = arith.constant 204 : index
    %c0_250 = arith.constant 0 : index
    %155 = vector.load %arg5[%c204, %c0_250] : memref<325x128xbf16, #tpu.memory_space<vmem>>, vector<4x128xbf16>
    tpu.vector_store %arg5[%c204, %c0_250], %154 {strides = array<i32>} : memref<325x128xbf16, #tpu.memory_space<vmem>>, vector<4x128xbf16>,
    %c0_251 = arith.constant 0 : index
    %c3_252 = arith.constant 3 : index
    %c0_253 = arith.constant 0 : index
    %c19_254 = arith.constant 19 : index
    %156 = vector.load %arg3[%c0_251, %c3_252, %c0_253, %c19_254] : memref<1x4x4x256xbf16, #tpu.memory_space<vmem>>, vector<1x1x4x128xbf16>
    %157 = vector.shape_cast %156 : vector<1x1x4x128xbf16> to vector<4x128xbf16>
    %c208 = arith.constant 208 : index
    %c0_255 = arith.constant 0 : index
    %158 = vector.load %arg5[%c208, %c0_255] : memref<325x128xbf16, #tpu.memory_space<vmem>>, vector<4x128xbf16>
    tpu.vector_store %arg5[%c208, %c0_255], %157 {strides = array<i32>} : memref<325x128xbf16, #tpu.memory_space<vmem>>, vector<4x128xbf16>,
    %c0_256 = arith.constant 0 : index
    %c2_257 = arith.constant 2 : index
    %c0_258 = arith.constant 0 : index
    %c20_259 = arith.constant 20 : index
    %159 = vector.load %arg3[%c0_256, %c2_257, %c0_258, %c20_259] : memref<1x4x4x256xbf16, #tpu.memory_space<vmem>>, vector<1x1x4x128xbf16>
    %160 = vector.shape_cast %159 : vector<1x1x4x128xbf16> to vector<4x128xbf16>
    %c212 = arith.constant 212 : index
    %c0_260 = arith.constant 0 : index
    %161 = vector.load %arg5[%c212, %c0_260] : memref<325x128xbf16, #tpu.memory_space<vmem>>, vector<4x128xbf16>
    tpu.vector_store %arg5[%c212, %c0_260], %160 {strides = array<i32>} : memref<325x128xbf16, #tpu.memory_space<vmem>>, vector<4x128xbf16>,
    %c0_261 = arith.constant 0 : index
    %c0_262 = arith.constant 0 : index
    %c0_263 = arith.constant 0 : index
    %c24_264 = arith.constant 24 : index
    %162 = vector.load %arg3[%c0_261, %c0_262, %c0_263, %c24_264] : memref<1x4x4x256xbf16, #tpu.memory_space<vmem>>, vector<1x1x4x128xbf16>
    %163 = vector.shape_cast %162 : vector<1x1x4x128xbf16> to vector<4x128xbf16>
    %c216 = arith.constant 216 : index
    %c0_265 = arith.constant 0 : index
    %164 = vector.load %arg5[%c216, %c0_265] : memref<325x128xbf16, #tpu.memory_space<vmem>>, vector<4x128xbf16>
    tpu.vector_store %arg5[%c216, %c0_265], %163 {strides = array<i32>} : memref<325x128xbf16, #tpu.memory_space<vmem>>, vector<4x128xbf16>,
    %c0_266 = arith.constant 0 : index
    %c1_267 = arith.constant 1 : index
    %c0_268 = arith.constant 0 : index
    %c24_269 = arith.constant 24 : index
    %165 = vector.load %arg3[%c0_266, %c1_267, %c0_268, %c24_269] : memref<1x4x4x256xbf16, #tpu.memory_space<vmem>>, vector<1x1x4x128xbf16>
    %166 = vector.shape_cast %165 : vector<1x1x4x128xbf16> to vector<4x128xbf16>
    %c220 = arith.constant 220 : index
    %c0_270 = arith.constant 0 : index
    %167 = vector.load %arg5[%c220, %c0_270] : memref<325x128xbf16, #tpu.memory_space<vmem>>, vector<4x128xbf16>
    tpu.vector_store %arg5[%c220, %c0_270], %166 {strides = array<i32>} : memref<325x128xbf16, #tpu.memory_space<vmem>>, vector<4x128xbf16>,
    %c0_271 = arith.constant 0 : index
    %c0_272 = arith.constant 0 : index
    %c0_273 = arith.constant 0 : index
    %c25 = arith.constant 25 : index
    %168 = vector.load %arg3[%c0_271, %c0_272, %c0_273, %c25] : memref<1x4x4x256xbf16, #tpu.memory_space<vmem>>, vector<1x1x4x128xbf16>
    %169 = vector.shape_cast %168 : vector<1x1x4x128xbf16> to vector<4x128xbf16>
    %c224 = arith.constant 224 : index
    %c0_274 = arith.constant 0 : index
    %170 = vector.load %arg5[%c224, %c0_274] : memref<325x128xbf16, #tpu.memory_space<vmem>>, vector<4x128xbf16>
    tpu.vector_store %arg5[%c224, %c0_274], %169 {strides = array<i32>} : memref<325x128xbf16, #tpu.memory_space<vmem>>, vector<4x128xbf16>,
    %c0_275 = arith.constant 0 : index
    %c1_276 = arith.constant 1 : index
    %c0_277 = arith.constant 0 : index
    %c25_278 = arith.constant 25 : index
    %171 = vector.load %arg3[%c0_275, %c1_276, %c0_277, %c25_278] : memref<1x4x4x256xbf16, #tpu.memory_space<vmem>>, vector<1x1x4x128xbf16>
    %172 = vector.shape_cast %171 : vector<1x1x4x128xbf16> to vector<4x128xbf16>
    %c228 = arith.constant 228 : index
    %c0_279 = arith.constant 0 : index
    %173 = vector.load %arg5[%c228, %c0_279] : memref<325x128xbf16, #tpu.memory_space<vmem>>, vector<4x128xbf16>
    tpu.vector_store %arg5[%c228, %c0_279], %172 {strides = array<i32>} : memref<325x128xbf16, #tpu.memory_space<vmem>>, vector<4x128xbf16>,
    %c0_280 = arith.constant 0 : index
    %c0_281 = arith.constant 0 : index
    %c0_282 = arith.constant 0 : index
    %c26 = arith.constant 26 : index
    %174 = vector.load %arg3[%c0_280, %c0_281, %c0_282, %c26] : memref<1x4x4x256xbf16, #tpu.memory_space<vmem>>, vector<1x1x4x128xbf16>
    %175 = vector.shape_cast %174 : vector<1x1x4x128xbf16> to vector<4x128xbf16>
    %c232 = arith.constant 232 : index
    %c0_283 = arith.constant 0 : index
    %176 = vector.load %arg5[%c232, %c0_283] : memref<325x128xbf16, #tpu.memory_space<vmem>>, vector<4x128xbf16>
    tpu.vector_store %arg5[%c232, %c0_283], %175 {strides = array<i32>} : memref<325x128xbf16, #tpu.memory_space<vmem>>, vector<4x128xbf16>,
    %c0_284 = arith.constant 0 : index
    %c1_285 = arith.constant 1 : index
    %c0_286 = arith.constant 0 : index
    %c26_287 = arith.constant 26 : index
    %177 = vector.load %arg3[%c0_284, %c1_285, %c0_286, %c26_287] : memref<1x4x4x256xbf16, #tpu.memory_space<vmem>>, vector<1x1x4x128xbf16>
    %178 = vector.shape_cast %177 : vector<1x1x4x128xbf16> to vector<4x128xbf16>
    %c236 = arith.constant 236 : index
    %c0_288 = arith.constant 0 : index
    %179 = vector.load %arg5[%c236, %c0_288] : memref<325x128xbf16, #tpu.memory_space<vmem>>, vector<4x128xbf16>
    tpu.vector_store %arg5[%c236, %c0_288], %178 {strides = array<i32>} : memref<325x128xbf16, #tpu.memory_space<vmem>>, vector<4x128xbf16>,
    %c0_289 = arith.constant 0 : index
    %c0_290 = arith.constant 0 : index
    %c0_291 = arith.constant 0 : index
    %c27 = arith.constant 27 : index
    %180 = vector.load %arg3[%c0_289, %c0_290, %c0_291, %c27] : memref<1x4x4x256xbf16, #tpu.memory_space<vmem>>, vector<1x1x4x128xbf16>
    %181 = vector.shape_cast %180 : vector<1x1x4x128xbf16> to vector<4x128xbf16>
    %c240 = arith.constant 240 : index
    %c0_292 = arith.constant 0 : index
    %182 = vector.load %arg5[%c240, %c0_292] : memref<325x128xbf16, #tpu.memory_space<vmem>>, vector<4x128xbf16>
    tpu.vector_store %arg5[%c240, %c0_292], %181 {strides = array<i32>} : memref<325x128xbf16, #tpu.memory_space<vmem>>, vector<4x128xbf16>,
    %c0_293 = arith.constant 0 : index
    %c1_294 = arith.constant 1 : index
    %c0_295 = arith.constant 0 : index
    %c27_296 = arith.constant 27 : index
    %183 = vector.load %arg3[%c0_293, %c1_294, %c0_295, %c27_296] : memref<1x4x4x256xbf16, #tpu.memory_space<vmem>>, vector<1x1x4x128xbf16>
    %184 = vector.shape_cast %183 : vector<1x1x4x128xbf16> to vector<4x128xbf16>
    %c244 = arith.constant 244 : index
    %c0_297 = arith.constant 0 : index
    %185 = vector.load %arg5[%c244, %c0_297] : memref<325x128xbf16, #tpu.memory_space<vmem>>, vector<4x128xbf16>
    tpu.vector_store %arg5[%c244, %c0_297], %184 {strides = array<i32>} : memref<325x128xbf16, #tpu.memory_space<vmem>>, vector<4x128xbf16>,
    %c0_298 = arith.constant 0 : index
    %c0_299 = arith.constant 0 : index
    %c0_300 = arith.constant 0 : index
    %c28_301 = arith.constant 28 : index
    %186 = vector.load %arg3[%c0_298, %c0_299, %c0_300, %c28_301] : memref<1x4x4x256xbf16, #tpu.memory_space<vmem>>, vector<1x1x4x128xbf16>
    %187 = vector.shape_cast %186 : vector<1x1x4x128xbf16> to vector<4x128xbf16>
    %c248 = arith.constant 248 : index
    %c0_302 = arith.constant 0 : index
    %188 = vector.load %arg5[%c248, %c0_302] : memref<325x128xbf16, #tpu.memory_space<vmem>>, vector<4x128xbf16>
    tpu.vector_store %arg5[%c248, %c0_302], %187 {strides = array<i32>} : memref<325x128xbf16, #tpu.memory_space<vmem>>, vector<4x128xbf16>,
    %c0_303 = arith.constant 0 : index
    %c2_304 = arith.constant 2 : index
    %c0_305 = arith.constant 0 : index
    %c24_306 = arith.constant 24 : index
    %189 = vector.load %arg3[%c0_303, %c2_304, %c0_305, %c24_306] : memref<1x4x4x256xbf16, #tpu.memory_space<vmem>>, vector<1x1x4x128xbf16>
    %190 = vector.shape_cast %189 : vector<1x1x4x128xbf16> to vector<4x128xbf16>
    %c252 = arith.constant 252 : index
    %c0_307 = arith.constant 0 : index
    %191 = vector.load %arg5[%c252, %c0_307] : memref<325x128xbf16, #tpu.memory_space<vmem>>, vector<4x128xbf16>
    tpu.vector_store %arg5[%c252, %c0_307], %190 {strides = array<i32>} : memref<325x128xbf16, #tpu.memory_space<vmem>>, vector<4x128xbf16>,
    %c0_308 = arith.constant 0 : index
    %c3_309 = arith.constant 3 : index
    %c0_310 = arith.constant 0 : index
    %c24_311 = arith.constant 24 : index
    %192 = vector.load %arg3[%c0_308, %c3_309, %c0_310, %c24_311] : memref<1x4x4x256xbf16, #tpu.memory_space<vmem>>, vector<1x1x4x128xbf16>
    %193 = vector.shape_cast %192 : vector<1x1x4x128xbf16> to vector<4x128xbf16>
    %c256 = arith.constant 256 : index
    %c0_312 = arith.constant 0 : index
    %194 = vector.load %arg5[%c256, %c0_312] : memref<325x128xbf16, #tpu.memory_space<vmem>>, vector<4x128xbf16>
    tpu.vector_store %arg5[%c256, %c0_312], %193 {strides = array<i32>} : memref<325x128xbf16, #tpu.memory_space<vmem>>, vector<4x128xbf16>,
    %c0_313 = arith.constant 0 : index
    %c2_314 = arith.constant 2 : index
    %c0_315 = arith.constant 0 : index
    %c25_316 = arith.constant 25 : index
    %195 = vector.load %arg3[%c0_313, %c2_314, %c0_315, %c25_316] : memref<1x4x4x256xbf16, #tpu.memory_space<vmem>>, vector<1x1x4x128xbf16>
    %196 = vector.shape_cast %195 : vector<1x1x4x128xbf16> to vector<4x128xbf16>
    %c260 = arith.constant 260 : index
    %c0_317 = arith.constant 0 : index
    %197 = vector.load %arg5[%c260, %c0_317] : memref<325x128xbf16, #tpu.memory_space<vmem>>, vector<4x128xbf16>
    tpu.vector_store %arg5[%c260, %c0_317], %196 {strides = array<i32>} : memref<325x128xbf16, #tpu.memory_space<vmem>>, vector<4x128xbf16>,
    %c0_318 = arith.constant 0 : index
    %c3_319 = arith.constant 3 : index
    %c0_320 = arith.constant 0 : index
    %c25_321 = arith.constant 25 : index
    %198 = vector.load %arg3[%c0_318, %c3_319, %c0_320, %c25_321] : memref<1x4x4x256xbf16, #tpu.memory_space<vmem>>, vector<1x1x4x128xbf16>
    %199 = vector.shape_cast %198 : vector<1x1x4x128xbf16> to vector<4x128xbf16>
    %c264 = arith.constant 264 : index
    %c0_322 = arith.constant 0 : index
    %200 = vector.load %arg5[%c264, %c0_322] : memref<325x128xbf16, #tpu.memory_space<vmem>>, vector<4x128xbf16>
    tpu.vector_store %arg5[%c264, %c0_322], %199 {strides = array<i32>} : memref<325x128xbf16, #tpu.memory_space<vmem>>, vector<4x128xbf16>,
    %c0_323 = arith.constant 0 : index
    %c2_324 = arith.constant 2 : index
    %c0_325 = arith.constant 0 : index
    %c26_326 = arith.constant 26 : index
    %201 = vector.load %arg3[%c0_323, %c2_324, %c0_325, %c26_326] : memref<1x4x4x256xbf16, #tpu.memory_space<vmem>>, vector<1x1x4x128xbf16>
    %202 = vector.shape_cast %201 : vector<1x1x4x128xbf16> to vector<4x128xbf16>
    %c268 = arith.constant 268 : index
    %c0_327 = arith.constant 0 : index
    %203 = vector.load %arg5[%c268, %c0_327] : memref<325x128xbf16, #tpu.memory_space<vmem>>, vector<4x128xbf16>
    tpu.vector_store %arg5[%c268, %c0_327], %202 {strides = array<i32>} : memref<325x128xbf16, #tpu.memory_space<vmem>>, vector<4x128xbf16>,
    %c0_328 = arith.constant 0 : index
    %c3_329 = arith.constant 3 : index
    %c0_330 = arith.constant 0 : index
    %c26_331 = arith.constant 26 : index
    %204 = vector.load %arg3[%c0_328, %c3_329, %c0_330, %c26_331] : memref<1x4x4x256xbf16, #tpu.memory_space<vmem>>, vector<1x1x4x128xbf16>
    %205 = vector.shape_cast %204 : vector<1x1x4x128xbf16> to vector<4x128xbf16>
    %c272 = arith.constant 272 : index
    %c0_332 = arith.constant 0 : index
    %206 = vector.load %arg5[%c272, %c0_332] : memref<325x128xbf16, #tpu.memory_space<vmem>>, vector<4x128xbf16>
    tpu.vector_store %arg5[%c272, %c0_332], %205 {strides = array<i32>} : memref<325x128xbf16, #tpu.memory_space<vmem>>, vector<4x128xbf16>,
    %c0_333 = arith.constant 0 : index
    %c2_334 = arith.constant 2 : index
    %c0_335 = arith.constant 0 : index
    %c27_336 = arith.constant 27 : index
    %207 = vector.load %arg3[%c0_333, %c2_334, %c0_335, %c27_336] : memref<1x4x4x256xbf16, #tpu.memory_space<vmem>>, vector<1x1x4x128xbf16>
    %208 = vector.shape_cast %207 : vector<1x1x4x128xbf16> to vector<4x128xbf16>
    %c276 = arith.constant 276 : index
    %c0_337 = arith.constant 0 : index
    %209 = vector.load %arg5[%c276, %c0_337] : memref<325x128xbf16, #tpu.memory_space<vmem>>, vector<4x128xbf16>
    tpu.vector_store %arg5[%c276, %c0_337], %208 {strides = array<i32>} : memref<325x128xbf16, #tpu.memory_space<vmem>>, vector<4x128xbf16>,
    %c0_338 = arith.constant 0 : index
    %c3_339 = arith.constant 3 : index
    %c0_340 = arith.constant 0 : index
    %c27_341 = arith.constant 27 : index
    %210 = vector.load %arg3[%c0_338, %c3_339, %c0_340, %c27_341] : memref<1x4x4x256xbf16, #tpu.memory_space<vmem>>, vector<1x1x4x128xbf16>
    %211 = vector.shape_cast %210 : vector<1x1x4x128xbf16> to vector<4x128xbf16>
    %c280 = arith.constant 280 : index
    %c0_342 = arith.constant 0 : index
    %212 = vector.load %arg5[%c280, %c0_342] : memref<325x128xbf16, #tpu.memory_space<vmem>>, vector<4x128xbf16>
    tpu.vector_store %arg5[%c280, %c0_342], %211 {strides = array<i32>} : memref<325x128xbf16, #tpu.memory_space<vmem>>, vector<4x128xbf16>,
    %c0_343 = arith.constant 0 : index
    %c2_344 = arith.constant 2 : index
    %c0_345 = arith.constant 0 : index
    %c28_346 = arith.constant 28 : index
    %213 = vector.load %arg3[%c0_343, %c2_344, %c0_345, %c28_346] : memref<1x4x4x256xbf16, #tpu.memory_space<vmem>>, vector<1x1x4x128xbf16>
    %214 = vector.shape_cast %213 : vector<1x1x4x128xbf16> to vector<4x128xbf16>
    %c284 = arith.constant 284 : index
    %c0_347 = arith.constant 0 : index
    %215 = vector.load %arg5[%c284, %c0_347] : memref<325x128xbf16, #tpu.memory_space<vmem>>, vector<4x128xbf16>
    tpu.vector_store %arg5[%c284, %c0_347], %214 {strides = array<i32>} : memref<325x128xbf16, #tpu.memory_space<vmem>>, vector<4x128xbf16>,
    %c0_348 = arith.constant 0 : index
    %c0_349 = arith.constant 0 : index
    %c0_350 = arith.constant 0 : index
    %c32_351 = arith.constant 32 : index
    %216 = vector.load %arg3[%c0_348, %c0_349, %c0_350, %c32_351] : memref<1x4x4x256xbf16, #tpu.memory_space<vmem>>, vector<1x1x4x128xbf16>
    %217 = vector.shape_cast %216 : vector<1x1x4x128xbf16> to vector<4x128xbf16>
    %c288 = arith.constant 288 : index
    %c0_352 = arith.constant 0 : index
    %218 = vector.load %arg5[%c288, %c0_352] : memref<325x128xbf16, #tpu.memory_space<vmem>>, vector<4x128xbf16>
    tpu.vector_store %arg5[%c288, %c0_352], %217 {strides = array<i32>} : memref<325x128xbf16, #tpu.memory_space<vmem>>, vector<4x128xbf16>,
    %c0_353 = arith.constant 0 : index
    %c1_354 = arith.constant 1 : index
    %c0_355 = arith.constant 0 : index
    %c32_356 = arith.constant 32 : index
    %219 = vector.load %arg3[%c0_353, %c1_354, %c0_355, %c32_356] : memref<1x4x4x256xbf16, #tpu.memory_space<vmem>>, vector<1x1x4x128xbf16>
    %220 = vector.shape_cast %219 : vector<1x1x4x128xbf16> to vector<4x128xbf16>
    %c292 = arith.constant 292 : index
    %c0_357 = arith.constant 0 : index
    %221 = vector.load %arg5[%c292, %c0_357] : memref<325x128xbf16, #tpu.memory_space<vmem>>, vector<4x128xbf16>
    tpu.vector_store %arg5[%c292, %c0_357], %220 {strides = array<i32>} : memref<325x128xbf16, #tpu.memory_space<vmem>>, vector<4x128xbf16>,
    %c0_358 = arith.constant 0 : index
    %c0_359 = arith.constant 0 : index
    %c0_360 = arith.constant 0 : index
    %c33 = arith.constant 33 : index
    %222 = vector.load %arg3[%c0_358, %c0_359, %c0_360, %c33] : memref<1x4x4x256xbf16, #tpu.memory_space<vmem>>, vector<1x1x4x128xbf16>
    %223 = vector.shape_cast %222 : vector<1x1x4x128xbf16> to vector<4x128xbf16>
    %c296 = arith.constant 296 : index
    %c0_361 = arith.constant 0 : index
    %224 = vector.load %arg5[%c296, %c0_361] : memref<325x128xbf16, #tpu.memory_space<vmem>>, vector<4x128xbf16>
    tpu.vector_store %arg5[%c296, %c0_361], %223 {strides = array<i32>} : memref<325x128xbf16, #tpu.memory_space<vmem>>, vector<4x128xbf16>,
    %c0_362 = arith.constant 0 : index
    %c1_363 = arith.constant 1 : index
    %c0_364 = arith.constant 0 : index
    %c33_365 = arith.constant 33 : index
    %225 = vector.load %arg3[%c0_362, %c1_363, %c0_364, %c33_365] : memref<1x4x4x256xbf16, #tpu.memory_space<vmem>>, vector<1x1x4x128xbf16>
    %226 = vector.shape_cast %225 : vector<1x1x4x128xbf16> to vector<4x128xbf16>
    %c300 = arith.constant 300 : index
    %c0_366 = arith.constant 0 : index
    %227 = vector.load %arg5[%c300, %c0_366] : memref<325x128xbf16, #tpu.memory_space<vmem>>, vector<4x128xbf16>
    tpu.vector_store %arg5[%c300, %c0_366], %226 {strides = array<i32>} : memref<325x128xbf16, #tpu.memory_space<vmem>>, vector<4x128xbf16>,
    %c0_367 = arith.constant 0 : index
    %c0_368 = arith.constant 0 : index
    %c0_369 = arith.constant 0 : index
    %c34 = arith.constant 34 : index
    %228 = vector.load %arg3[%c0_367, %c0_368, %c0_369, %c34] : memref<1x4x4x256xbf16, #tpu.memory_space<vmem>>, vector<1x1x4x128xbf16>
    %229 = vector.shape_cast %228 : vector<1x1x4x128xbf16> to vector<4x128xbf16>
    %c304 = arith.constant 304 : index
    %c0_370 = arith.constant 0 : index
    %230 = vector.load %arg5[%c304, %c0_370] : memref<325x128xbf16, #tpu.memory_space<vmem>>, vector<4x128xbf16>
    tpu.vector_store %arg5[%c304, %c0_370], %229 {strides = array<i32>} : memref<325x128xbf16, #tpu.memory_space<vmem>>, vector<4x128xbf16>,
    %c0_371 = arith.constant 0 : index
    %c1_372 = arith.constant 1 : index
    %c0_373 = arith.constant 0 : index
    %c34_374 = arith.constant 34 : index
    %231 = vector.load %arg3[%c0_371, %c1_372, %c0_373, %c34_374] : memref<1x4x4x256xbf16, #tpu.memory_space<vmem>>, vector<1x1x4x128xbf16>
    %232 = vector.shape_cast %231 : vector<1x1x4x128xbf16> to vector<4x128xbf16>
    %c308 = arith.constant 308 : index
    %c0_375 = arith.constant 0 : index
    %233 = vector.load %arg5[%c308, %c0_375] : memref<325x128xbf16, #tpu.memory_space<vmem>>, vector<4x128xbf16>
    tpu.vector_store %arg5[%c308, %c0_375], %232 {strides = array<i32>} : memref<325x128xbf16, #tpu.memory_space<vmem>>, vector<4x128xbf16>,
    %c0_376 = arith.constant 0 : index
    %c0_377 = arith.constant 0 : index
    %c0_378 = arith.constant 0 : index
    %c35 = arith.constant 35 : index
    %234 = vector.load %arg3[%c0_376, %c0_377, %c0_378, %c35] : memref<1x4x4x256xbf16, #tpu.memory_space<vmem>>, vector<1x1x4x128xbf16>
    %235 = vector.shape_cast %234 : vector<1x1x4x128xbf16> to vector<4x128xbf16>
    %c312 = arith.constant 312 : index
    %c0_379 = arith.constant 0 : index
    %236 = vector.load %arg5[%c312, %c0_379] : memref<325x128xbf16, #tpu.memory_space<vmem>>, vector<4x128xbf16>
    tpu.vector_store %arg5[%c312, %c0_379], %235 {strides = array<i32>} : memref<325x128xbf16, #tpu.memory_space<vmem>>, vector<4x128xbf16>,
    %c0_380 = arith.constant 0 : index
    %c1_381 = arith.constant 1 : index
    %c0_382 = arith.constant 0 : index
    %c35_383 = arith.constant 35 : index
    %237 = vector.load %arg3[%c0_380, %c1_381, %c0_382, %c35_383] : memref<1x4x4x256xbf16, #tpu.memory_space<vmem>>, vector<1x1x4x128xbf16>
    %238 = vector.shape_cast %237 : vector<1x1x4x128xbf16> to vector<4x128xbf16>
    %c316 = arith.constant 316 : index
    %c0_384 = arith.constant 0 : index
    %239 = vector.load %arg5[%c316, %c0_384] : memref<325x128xbf16, #tpu.memory_space<vmem>>, vector<4x128xbf16>
    tpu.vector_store %arg5[%c316, %c0_384], %238 {strides = array<i32>} : memref<325x128xbf16, #tpu.memory_space<vmem>>, vector<4x128xbf16>,
    %c0_385 = arith.constant 0 : index
    %c0_386 = arith.constant 0 : index
    %c0_387 = arith.constant 0 : index
    %c36_388 = arith.constant 36 : index
    %240 = vector.load %arg3[%c0_385, %c0_386, %c0_387, %c36_388] : memref<1x4x4x256xbf16, #tpu.memory_space<vmem>>, vector<1x1x4x128xbf16>
    %241 = vector.shape_cast %240 : vector<1x1x4x128xbf16> to vector<4x128xbf16>
    %c320 = arith.constant 320 : index
    %c0_389 = arith.constant 0 : index
    %242 = vector.load %arg5[%c320, %c0_389] : memref<325x128xbf16, #tpu.memory_space<vmem>>, vector<4x128xbf16>
    tpu.vector_store %arg5[%c320, %c0_389], %241 {strides = array<i32>} : memref<325x128xbf16, #tpu.memory_space<vmem>>, vector<4x128xbf16>,
    %cst = arith.constant 1.000000e+00 : bf16
    %243 = vector.broadcast %cst : bf16 to vector<1x128xbf16>
    %c324 = arith.constant 324 : index
    %c0_390 = arith.constant 0 : index
    %244 = vector.load %arg5[%c324, %c0_390] : memref<325x128xbf16, #tpu.memory_space<vmem>>, vector<1x128xbf16>
    tpu.vector_store %arg5[%c324, %c0_390], %243 {strides = array<i32>} : memref<325x128xbf16, #tpu.memory_space<vmem>>, vector<1x128xbf16>,
    %c0_391 = arith.constant 0 : index
    %c0_392 = arith.constant 0 : index
    %245 = vector.load %arg1[%c0_391, %c0_392] : memref<32x325xbf16, #tpu.memory_space<vmem>>, vector<32x325xbf16>
    %c0_393 = arith.constant 0 : index
    %c0_394 = arith.constant 0 : index
    %246 = vector.load %arg5[%c0_393, %c0_394] : memref<325x128xbf16, #tpu.memory_space<vmem>>, vector<325x128xbf16>
    %cst_395 = arith.constant dense<0.000000e+00> : vector<32x128xf32>
    %247 = tpu.matmul %245, %246, %cst_395 {dimension_numbers = #tpu.dot_dimension_numbers<[1], [0], [0], [1], [0, 0, 1, 1], [], []>} : vector<32x325xbf16>, vector<325x128xbf16>, vector<32x128xf32> -> vector<32x128xf32>
    %c0_396 = arith.constant 0 : index
    %c0_397 = arith.constant 0 : index
    %248 = vector.load %arg2[%c0_396, %c0_397] : memref<32x32xf32, #tpu.memory_space<vmem>>, vector<32x32xf32>
    %249 = arith.mulf %247, %247 : vector<32x128xf32>
    %cst_398 = arith.constant dense<0.000000e+00> : vector<32x128xf32>
    %250 = tpu.matmul %248, %249, %cst_398 {dimension_numbers = #tpu.dot_dimension_numbers<[1], [0], [0], [1], [0, 0, 1, 1], [], []>} : vector<32x32xf32>, vector<32x128xf32>, vector<32x128xf32> -> vector<32x128xf32>
    %cst_399 = arith.constant 1.000000e+00 : f32
    %251 = vector.broadcast %cst_399 : f32 to vector<32x128xf32>
    %252 = arith.addf %251, %250 : vector<32x128xf32>
    %253 = tpu.reciprocal %252 {approx = true} : vector<32x128xf32> -> vector<32x128xf32>
    %254 = arith.mulf %250, %253 : vector<32x128xf32>
    %cst_400 = arith.constant 9.99999993E-9 : f32
    %255 = vector.broadcast %cst_400 : f32 to vector<32x128xf32>
    %256 = arith.addf %250, %255 : vector<32x128xf32>
    %257 = math.rsqrt %256 : vector<32x128xf32>
    %258 = arith.mulf %254, %257 : vector<32x128xf32>
    %259 = arith.mulf %247, %258 : vector<32x128xf32>
    %260 = arith.truncf %259 : vector<32x128xf32> to vector<32x128xbf16>
    %c0_401 = arith.constant 0 : index
    %c0_402 = arith.constant 0 : index
    %c0_403 = arith.constant 0 : index
    %261 = vector.load %arg4[%c0_401, %c0_402, %c0_403] : memref<1x32x128xbf16, #tpu.memory_space<vmem>>, vector<1x32x128xbf16>
    %262 = vector.shape_cast %261 : vector<1x32x128xbf16> to vector<32x128xbf16>
    %263 = vector.shape_cast %260 : vector<32x128xbf16> to vector<1x32x128xbf16>
    tpu.vector_store %arg4[%c0_401, %c0_402, %c0_403], %263 {strides = array<i32>} : memref<1x32x128xbf16, #tpu.memory_space<vmem>>, vector<1x32x128xbf16>,
    return
  }
  func.func @transform_0(%arg0: i32) -> (i32, i32) {
    %c0_i32 = arith.constant 0 : i32
    %c0_i32_0 = arith.constant 0 : i32
    %c0_i32_1 = arith.constant 0 : i32
    return %c0_i32, %c0_i32_0 : i32, i32
  }
  func.func @transform_1(%arg0: i32) -> (i32, i32) {
    %c0_i32 = arith.constant 0 : i32
    %c0_i32_0 = arith.constant 0 : i32
    %c0_i32_1 = arith.constant 0 : i32
    return %c0_i32, %c0_i32_0 : i32, i32
  }
  func.func @transform_2(%arg0: i32) -> (i32, i32, i32, i32) {
    %c0_i32 = arith.constant 0 : i32
    %c0_i32_0 = arith.constant 0 : i32
    %c0_i32_1 = arith.constant 0 : i32
    %c0_i32_2 = arith.constant 0 : i32
    return %arg0, %c0_i32, %c0_i32_0, %c0_i32_1 : i32, i32, i32, i32
  }
  func.func @transform_3(%arg0: i32) -> (i32, i32, i32) {
    %c0_i32 = arith.constant 0 : i32
    %c0_i32_0 = arith.constant 0 : i32
    %c0_i32_1 = arith.constant 0 : i32
    return %arg0, %c0_i32, %c0_i32_0 : i32, i32, i32
  }
}

</mosaic_0001>

<bundles_post_ra>
// kernel: conv2d_primary_layer.1
= control target key start
LH: loop header
LB: loop body
LE: loop exit
PB: predicated region body
PF: predicated region fallthrough
CT: control target
= control target key end

     0   :  { %s2364_s12 = smov 0   ;;  %s2810_s0 = inlined_call_operand.vmem [shape: bf16[32,325], index: 0, kind: input, shape index: {}]   ;;  %s2811_s1 = inlined_call_operand.vmem [shape: f32[32,32], index: 1, kind: input, shape index: {}]   ;;  %s2812_s2 = inlined_call_operand.vmem [shape: bf16[2,4,4,256], index: 2, kind: input, shape index: {}]   ;;  %s2813_s3 = inlined_call_operand.vmem [shape: bf16[2,32,128], index: 3, kind: output, shape index: {}]  }
   0x1 LB: > { %s1950_s13 = sadd.s32 4294967295, %s2316_s12   ;;  %p1954_p0 = scmp.ge.s32.totalorder %s2316_s12, 1  ;;  %s2316_s12 = sphi %s2364_s12, %s13_s12  }
   0x2   : > { %p137_p1 = scmp.lt.s32.totalorder %s2316_s12, 3 }
   0x4   : > { %p138_p2 = pnand %p1954_p0, %p137_p1 }
   0x5   : > { %p161_p3 = scmp.lt.s32.totalorder (!%p138_p2), %s1950_s13, 1  ;;  %v210_v0 = vlaneseq (!%p138_p2)  ;;  %v2318_v1 = vmov (!%p138_p2), 1983009808   ;;  %s2319_s18 = smov (!%p138_p2), 117   ;;  %vm533_vm0 = vcmask (!%p138_p2), 957440   ;;  %vm501_vm1 = vcmask (!%p138_p2), 965632  }
   0x6   : > { %141 = sbr.rel (%p138_p2) target bundleno = 770 (0x302), region = 32  ;;  %v208_v2 = vunpack.c.l.s4 (!%p138_p2), %v2318_v1  ;;  %s2320_s19 = smov (!%p138_p2), 118   ;;  %vm565_vm2 = vcmask (!%p138_p2), 949248   ;;  %vm200_vm3 = vcmask (!%p138_p2), 1039360   ;;  %vm721_vm4 = vcmask (!%p138_p2), 916480  }
   0x7   : > { %v211_v3 = vshrl.u32 (!%p138_p2), %v210_v0, 7  ;;  %s2321_s20 = smov (!%p138_p2), 116   ;;  %s2322_s21 = smov (!%p138_p2), 127   ;;  %vm753_vm5 = vcmask (!%p138_p2), 908288   ;;  %vm232_vm6 = vcmask (!%p138_p2), 1031168   ;;  %vm264_vm7 = vcmask (!%p138_p2), 1022976  }
   0x8   : > { %v209_v4 = vunpack.c.0.s8 (!%p138_p2), %v208_v2  ;;  %s2323_s22 = smov (!%p138_p2), 112   ;;  %s2324_s23 = smov (!%p138_p2), 111   ;;  %vm1421_vm8 = vcmask (!%p138_p2), 1042434   ;;  %vm1422_vm9 = vsmask.f32 (!%p138_p2), 2304  ;;  %vm785_vm11 = vcmask (!%p138_p2), 900096  }
   0x9   : > { %s2325_s24 = smov (!%p138_p2), 126   ;;  %s2326_s25 = smov (!%p138_p2), 125   ;;  %vm1423_vm10 = vmand (!%p138_p2), %vm1421_vm8, %vm1422_vm9  ;;  %vm817_vm12 = vcmask (!%p138_p2), 891904   ;;  %vm296_vm13 = vcmask (!%p138_p2), 1014784   ;;  %vm849_vm14 = vcmask (!%p138_p2), 883712   ;;  %vm1629_vm15 = vcmask (!%p138_p2), 564224  }
   0xa   : > { %v2382_v5 = vsub.s32 (!%p138_p2), %v209_v4, %v211_v3  ;;  %s2327_s26 = smov (!%p138_p2), 110   ;;  %s2328_s27 = smov (!%p138_p2), 109   ;;  %vm1101_vm8 = vcmask (!%p138_p2), 826368   ;;  %vm1133_vm9 = vcmask (!%p138_p2), 818176  }
   0xb   : > { %s2329_s28 = smov (!%p138_p2), 124   ;;  %s2330_s29 = smov (!%p138_p2), 108  }
   0xc   : > { %s2331_s30 = smov (!%p138_p2), 120   ;;  %s2332_s4 = smov (!%p138_p2), 103  }
   0xd   : > { %s2815_s13 = smov (!%p161_p3, %s1950_s13), 1  ;;  %s2333_s5 = smov 104  }
   0xe   : > { %s2095_s14 = sshll.u32 %s2815_s13, 4  ;;  %s2334_s6 = smov 102  }
   0xf   : > { %s2380_s17 = scalar_lea.vmem %s2812_s2, %s2095_s14  ;;  %s2335_s7 = smov 119  }
  0x10   : > { %v2385_v6 = vld.sshfl [vmem:[%s2380_s17 + $0xc] sm:$0x33 pattern:$0x76325410]  ;;  %v2225_v7 = vld [vmem:[%s2380_s17 + $0x8] ss:$0 sps:$4 sm:$0xff]   ;;  %s170_s16 = scalar_lea.vmem %s2813_s3, %s2095_s14 }
  0x11   : > { %687 = vrot.lane.b32.xlu1 %v2385_v6, %s2319_s18  ;;  %656 = vrot.lane.b32.xlu0 %v2385_v6, %s2320_s19  ;;  %v2393_v8 = vld.sshfl [vmem:[%s2380_s17] sm:$0x33 pattern:$0x76325410]  ;;  %v2226_v9 = vld [vmem:[%s2380_s17 + $0x4] ss:$0 sps:$4 sm:$0xff]   ;;  %v702_v10 = vrot.slane %v2225_v7, %v2382_v5 }
  0x12   : > { %v2227_v11 = vld [vmem:[%s2380_s17 + $0x8] ss:$0 sps:$4 sm:$0xff]   ;;  %v213_v12 = vrot.slane %v2226_v9, %v2382_v5  ;;  %v2228_v14 = vld [vmem:[%s2380_s17 + $0x4] ss:$0 sps:$4 sm:$0xff]   ;;  %v173_v60 = vld [vmem:[%s2380_s17] sm:$0x3] }
  0x13   : > { %v671_v13 = vrot.slane %v2227_v11, %v2382_v5  ;;  %v734_v15 = vrot.slane %v2228_v14, %v2382_v5  ;;  %v2229_v16 = vld [vmem:[%s2380_s17 + $0x4] ss:$0 sps:$4 sm:$0xff]   ;;  %v2418_v21 = vld [vmem:[%s2380_s17 + $0x8] ss:$0 sps:$4 sm:$0xff]   ;;  %174 = vst [vmem:[#allocation2] sm:$0x3] %v173_v60 }
  0x14   : > { %v766_v17 = vrot.slane %v2229_v16, %v2382_v5  ;;  %v2230_v18 = vld [vmem:[%s2380_s17 + $0x4] ss:$0 sps:$4 sm:$0xff]   ;;  %v2423_v23 = vld [vmem:[%s2380_s17 + $0x8] ss:$0 sps:$4 sm:$0xff]   ;;  %v1177_v26 = vrot.slane %v2418_v21, %v2382_v5  ;;  %s2336_s8 = smov 101   ;;  %s2337_s9 = smov 100  }
  0x15   : > { %703 = vrot.lane.b32.xlu1 %v702_v10, %s2321_s20  ;;  %197 = vrot.lane.b32.xlu0 %v2393_v8, %s2322_s21  ;;  %v2414_v19 = vld [vmem:[%s2380_s17 + $0x4] ss:$0 sps:$4 sm:$0xff]   ;;  %v2426_v24 = vld [vmem:[%s2380_s17 + $0x8] ss:$0 sps:$4 sm:$0xff]   ;;  %v245_v25 = vrot.slane %v2230_v18, %v2382_v5  ;;  %v1208_v28 = vrot.slane %v2423_v23, %v2382_v5  ;;  %s2338_s10 = smov 96   ;;  %s2339_s11 = smov 95  }
  0x16   : > { %v2231_v20 = vld [vmem:[%s2380_s17 + $0x4] ss:$0 sps:$4 sm:$0xff]   ;;  %v450_v22 = vrot.slane %v2414_v19, %v2382_v5  ;;  %v986_v29 = vrot.slane %v2426_v24, %v2382_v5  ;;  %v2451_v34 = vld [vmem:[%s2380_s17 + $0x8] ss:$0 sps:$4 sm:$0xff]  }
  0x17   : > { %v2435_v27 = vld [vmem:[%s2380_s17 + $0x4] ss:$0 sps:$4 sm:$0xff]   ;;  %v2456_v36 = vld [vmem:[%s2380_s17 + $0x8] ss:$0 sps:$4 sm:$0xff]   ;;  %v277_v37 = vrot.slane %v2231_v20, %v2382_v5  ;;  %v1239_v39 = vrot.slane %v2451_v34, %v2382_v5 }
  0x18   : > { %v2442_v30 = vld [vmem:[%s2380_s17 + $0x4] ss:$0 sps:$4 sm:$0xff]   ;;  %v1018_v32 = vrot.slane %v2435_v27, %v2382_v5  ;;  %v1270_v41 = vrot.slane %v2456_v36, %v2382_v5  ;;  %v2481_v46 = vld [vmem:[%s2380_s17 + $0x8] ss:$0 sps:$4 sm:$0xff]  }
  0x19   : > { %214 = vrot.lane.b32.xlu1 %v213_v12, %s2322_s21  ;;  %672 = vrot.lane.b32.xlu0 %v671_v13, %s2319_s18  ;;  %v2232_v31 = vld [vmem:[%s2380_s17 + $0x4] ss:$0 sps:$4 sm:$0xff]   ;;  %v482_v35 = vrot.slane %v2442_v30, %v2382_v5  ;;  %v578_v52 = vrot.slane %v2481_v46, %v2382_v5  ;;  %v2507_v56 = vld [vmem:[%s2380_s17 + $0x8] ss:$0 sps:$4 sm:$0xff]  }
  0x1a   : > { %v2448_v33 = vld [vmem:[%s2380_s17 + $0x4] ss:$0 sps:$4 sm:$0xff]   ;;  %v798_v51 = vrot.slane %v2232_v31, %v2382_v5  ;;  %v2234_v57 = vld [vmem:[%s2380_s17 + $0x8] ss:$0 sps:$4 sm:$0xff]   ;;  %v1146_v61 = vrot.slane %v2507_v56, %v2382_v5  ;;  %v1970_v13 = vld [vmem:[%s2380_s17 + $0xc] sm:$0x3] }
  0x1b   : > { %v514_v38 = vrot.slane %v2448_v33, %v2382_v5  ;;  %v2467_v40 = vld [vmem:[%s2380_s17 + $0x4] ss:$0 sps:$4 sm:$0xff]   ;;  %v2513_v59 = vld [vmem:[%s2380_s17 + $0x8] ss:$0 sps:$4 sm:$0xff]   ;;  %v325_v10 = vrot.slane %v2234_v57, %v2382_v5  ;;  %315 = vst [vmem:[#allocation2 + $0x14] sm:$0x3] %v1970_v13 }
  0x1c   : > { %v2472_v42 = vld [vmem:[%s2380_s17 + $0x4] ss:$0 sps:$4 sm:$0xff]   ;;  %v1050_v45 = vrot.slane %v2467_v40, %v2382_v5  ;;  %v609_v0 = vrot.slane %v2513_v59, %v2382_v5  ;;  %v2526_v1 = vld [vmem:[%s2380_s17 + $0x8] ss:$0 sps:$4 sm:$0xff]  }
  0x1d   : > { %735 = vrot.lane.b32.xlu1 %v734_v15, %s2323_s22  ;;  %718 = vrot.lane.b32.xlu0 %v2393_v8, %s2323_s22  ;;  %v2475_v43 = vld [vmem:[%s2380_s17 + $0x4] ss:$0 sps:$4 sm:$0xff]   ;;  %v1082_v47 = vrot.slane %v2472_v42, %v2382_v5  ;;  %v640_v3 = vrot.slane %v2526_v1, %v2382_v5  ;;  %v2269_v9 = vld [vmem:[%s2380_s17 + $0x8] ss:$0 sps:$4 sm:$0x33]  }
  0x1e   : > { %v2233_v44 = vld [vmem:[%s2380_s17 + $0x4] ss:$0 sps:$4 sm:$0xff]   ;;  %v546_v48 = vrot.slane %v2475_v43, %v2382_v5  ;;  %v2235_v11 = vld [vmem:[%s2380_s17 + $0x8] ss:$0 sps:$4 sm:$0xff]  }
  0x1f   : > { %v2488_v49 = vld [vmem:[%s2380_s17 + $0x4] ss:$0 sps:$4 sm:$0xff]   ;;  %v830_v63 = vrot.slane %v2233_v44, %v2382_v5  ;;  %1969 = vst.sshfl [vmem:[#allocation2 + $0x10] sm:$0x30 pattern:$0x76325410] %v2269_v9  ;;  %v862_v14 = vrot.slane %v2235_v11, %v2382_v5 }
  0x20   : > { %v2491_v50 = vld [vmem:[%s2380_s17 + $0x4] ss:$0 sps:$4 sm:$0xff]   ;;  %v1302_v54 = vrot.slane %v2488_v49, %v2382_v5  ;;  %v2236_v15 = vld [vmem:[%s2380_s17 + $0x8] ss:$0 sps:$4 sm:$0xff]  }
  0x21   : > { %767 = vrot.lane.b32.xlu1 %v766_v17, %s2324_s23  ;;  %750 = vrot.lane.b32.xlu0 %v2393_v8, %s2324_s23  ;;  %v2500_v53 = vld [vmem:[%s2380_s17 + $0x4] ss:$0 sps:$4 sm:$0xff]   ;;  %v1334_v55 = vrot.slane %v2491_v50, %v2382_v5  ;;  %v893_v16 = vrot.slane %v2236_v15, %v2382_v5  ;;  %v2237_v17 = vld [vmem:[%s2380_s17 + $0x8] ss:$0 sps:$4 sm:$0xff]  }
  0x22   : > { %v1114_v58 = vrot.slane %v2500_v53, %v2382_v5  ;;  %v2261_v62 = vld [vmem:[%s2380_s17 + $0x4] ss:$0 sps:$4 sm:$0x33]   ;;  %v356_v18 = vrot.slane %v2237_v17, %v2382_v5  ;;  %v2238_v20 = vld [vmem:[%s2380_s17 + $0x8] ss:$0 sps:$4 sm:$0xff]  }
  0x23   : > { %1960 = vst.sshfl [vmem:[#allocation2] sm:$0x30 pattern:$0x76325410] %v2261_v62  ;;  %v2529_v2 = vld [vmem:[%s2380_s17 + $0x4] ss:$0 sps:$4 sm:$0xff]  }
  0x24   : > { %v2534_v4 = vld [vmem:[%s2380_s17 + $0x4] ss:$0 sps:$4 sm:$0xff]   ;;  %v1366_v7 = vrot.slane %v2529_v2, %v2382_v5  ;;  %v2239_v31 = vld [vmem:[%s2380_s17 + $0x8] ss:$0 sps:$4 sm:$0xff]  }
  0x25   : > { %246 = vrot.lane.b32.xlu1 %v245_v25, %s2325_s24  ;;  %229 = vrot.lane.b32.xlu0 %v2393_v8, %s2325_s24  ;;  %v1398_v12 = vrot.slane %v2534_v4, %v2382_v5  ;;  %v387_v25 = vrot.slane %v2238_v20, %v2382_v5  ;;  %v2240_v44 = vld [vmem:[%s2380_s17 + $0x8] ss:$0 sps:$4 sm:$0xff]   ;;  %v2286_v1 = vld [vmem:[%s2810_s0 + $0x4] ss:$12 sps:$4 sm:$0xff]  }
  0x26   : > { %v2241_v57 = vld [vmem:[%s2380_s17 + $0x8] ss:$0 sps:$4 sm:$0xff]   ;;  %s2340_s17 = smov 94   ;;  %1675 = vmatprep.mubr.bf16.mxu0 %v2286_v1 }
  0x27   : > { %v418_v60 = vrot.slane %v2241_v57, %v2382_v5 }
  0x29   : > { %278 = vrot.lane.b32.xlu1 %v277_v37, %s2326_s25  ;;  %261 = vrot.lane.b32.xlu0 %v2393_v8, %s2326_s25  ;;  %v924_v37 = vrot.slane %v2239_v31, %v2382_v5 }
  0x2d   : > { %799 = vrot.lane.b32.xlu1 %v798_v51, %s2327_s26  ;;  %782 = vrot.lane.b32.xlu0 %v2393_v8, %s2327_s26  ;;  %v955_v51 = vrot.slane %v2240_v44, %v2382_v5 }
  0x31   : > { %831 = vrot.lane.b32.xlu1 %v830_v63, %s2328_s27  ;;  %814 = vrot.lane.b32.xlu0 %v2393_v8, %s2328_s27 }
  0x35   : > { %326 = vrot.lane.b32.xlu1 %v325_v10, %s2322_s21  ;;  %293 = vrot.lane.b32.xlu0 %v2393_v8, %s2329_s28 }
  0x39   : > { %863 = vrot.lane.b32.xlu1 %v862_v14, %s2323_s22  ;;  %846 = vrot.lane.b32.xlu0 %v2393_v8, %s2330_s29 }
  0x3d   : > { %894 = vrot.lane.b32.xlu1 %v893_v16, %s2324_s23  ;;  %878 = vrot.lane.b32.xlu0 %v2385_v6, %s2323_s22 }
  0x41   : > { %357 = vrot.lane.b32.xlu1 %v356_v18, %s2325_s24  ;;  %341 = vrot.lane.b32.xlu0 %v2385_v6, %s2322_s21 }
  0x45   : > { %388 = vrot.lane.b32.xlu1 %v387_v25, %s2326_s25  ;;  %372 = vrot.lane.b32.xlu0 %v2385_v6, %s2325_s24 }
  0x49   : > { %925 = vrot.lane.b32.xlu1 %v924_v37, %s2327_s26  ;;  %909 = vrot.lane.b32.xlu0 %v2385_v6, %s2324_s23 }
  0x4d   : > { %956 = vrot.lane.b32.xlu1 %v955_v51, %s2328_s27  ;;  %940 = vrot.lane.b32.xlu0 %v2385_v6, %s2327_s26 }
  0x51   : > { %419 = vrot.lane.b32.xlu1 %v418_v60, %s2329_s28  ;;  %403 = vrot.lane.b32.xlu0 %v2385_v6, %s2326_s25 }
  0x55   : > { %451 = vrot.lane.b32.xlu1 %v450_v22, %s2331_s30  ;;  %434 = vrot.lane.b32.xlu0 %v2393_v8, %s2331_s30 }
  0x59   : > { %1178 = vrot.lane.b32.xlu1 %v1177_v26, %s2332_s4  ;;  %1162 = vrot.lane.b32.xlu0 %v2385_v6, %s2333_s5 }
  0x5d   : > { %1209 = vrot.lane.b32.xlu1 %v1208_v28, %s2334_s6  ;;  %1193 = vrot.lane.b32.xlu0 %v2385_v6, %s2332_s4 }
  0x61   : > { %987 = vrot.lane.b32.xlu1 %v986_v29, %s2330_s29  ;;  %971 = vrot.lane.b32.xlu0 %v2385_v6, %s2328_s27 }
  0x65   : > { %1019 = vrot.lane.b32.xlu1 %v1018_v32, %s2333_s5  ;;  %1002 = vrot.lane.b32.xlu0 %v2393_v8, %s2333_s5 }
  0x69   : > { %483 = vrot.lane.b32.xlu1 %v482_v35, %s2335_s7  ;;  %466 = vrot.lane.b32.xlu0 %v2393_v8, %s2335_s7 }
  0x6d   : > { %515 = vrot.lane.b32.xlu1 %v514_v38, %s2320_s19  ;;  %498 = vrot.lane.b32.xlu0 %v2393_v8, %s2320_s19 }
  0x71   : > { %1240 = vrot.lane.b32.xlu1 %v1239_v39, %s2336_s8  ;;  %1224 = vrot.lane.b32.xlu0 %v2385_v6, %s2334_s6 }
  0x75   : > { %1271 = vrot.lane.b32.xlu1 %v1270_v41, %s2337_s9  ;;  %1255 = vrot.lane.b32.xlu0 %v2385_v6, %s2336_s8 }
  0x79   : > { %1051 = vrot.lane.b32.xlu1 %v1050_v45, %s2332_s4  ;;  %1034 = vrot.lane.b32.xlu0 %v2393_v8, %s2332_s4 }
  0x7d   : > { %1083 = vrot.lane.b32.xlu1 %v1082_v47, %s2334_s6  ;;  %1066 = vrot.lane.b32.xlu0 %v2393_v8, %s2334_s6 }
  0x81   : > { %547 = vrot.lane.b32.xlu1 %v546_v48, %s2319_s18  ;;  %530 = vrot.lane.b32.xlu0 %v2393_v8, %s2319_s18  ;;  %s2341_s18 = smov 93  }
  0x83   : > { %v688_v19 = vpop.permute.xlu1 %687  ;;  %v657_v21 = vpop.permute.xlu0 %656 }
  0x84   : > { %v689_v22 = vrot.slane %v688_v19, 4  ;;  %v658_v23 = vrot.slane %v657_v21, 4 }
  0x85   : > { %579 = vrot.lane.b32.xlu1 %v578_v52, %s2331_s30  ;;  %562 = vrot.lane.b32.xlu0 %v2393_v8, %s2321_s20 }
  0x86   : > { %v690_v24 = vsel %vm533_vm0, %v688_v19, %v689_v22  ;;  %v659_v26 = vsel %vm501_vm1, %v657_v21, %v658_v23 }
  0x87   : > { %692 = vst [vmem:[#allocation2 + $0x44] sm:$0x3] %v690_v24  ;;  %661 = vst [vmem:[#allocation2 + $0x40] sm:$0x3] %v659_v26  ;;  %v704_v27 = vpop.permute.xlu1 %703  ;;  %v198_v28 = vpop.permute.xlu0 %197 }
  0x88   : > { %v705_v29 = vrot.slane %v704_v27, 4  ;;  %v199_v30 = vrot.slane %v198_v28, 4 }
  0x89   : > { %1303 = vrot.lane.b32.xlu1 %v1302_v54, %s2338_s10  ;;  %1286 = vrot.lane.b32.xlu0 %v2393_v8, %s2338_s10 }
  0x8a   : > { %v706_v32 = vsel %vm565_vm2, %v704_v27, %v705_v29  ;;  %v201_v33 = vsel %vm200_vm3, %v198_v28, %v199_v30  ;;  %v2292_v27 = vld [vmem:[%s2810_s0 + $0x8] ss:$12 sps:$4 sm:$0xff]  }
  0x8b   : > { %708 = vst [vmem:[#allocation2 + $0x44] sm:$0xc] %v706_v32  ;;  %203 = vst [vmem:[#allocation2 + $0x4] sm:$0x3] %v201_v33  ;;  %v215_v34 = vpop.permute.xlu1 %214  ;;  %v673_v35 = vpop.permute.xlu0 %672  ;;  %2165 = vmatprep.mubr.msk.bf16.mxu1 %vm1629_vm15, %v2292_v27 }
  0x8c   : > { %v216_v36 = vrot.slane %v215_v34, 4  ;;  %v674_v38 = vrot.slane %v673_v35, 4 }
  0x8d   : > { %1335 = vrot.lane.b32.xlu1 %v1334_v55, %s2339_s11  ;;  %1318 = vrot.lane.b32.xlu0 %v2393_v8, %s2339_s11 }
  0x8e   : > { %v217_v39 = vsel %vm200_vm3, %v215_v34, %v216_v36  ;;  %v675_v40 = vsel %vm533_vm0, %v673_v35, %v674_v38 }
  0x8f   : > { %219 = vst [vmem:[#allocation2 + $0x4] sm:$0xc] %v217_v39  ;;  %677 = vst [vmem:[#allocation2 + $0x40] sm:$0xc] %v675_v40  ;;  %v736_v41 = vpop.permute.xlu1 %735  ;;  %v719_v42 = vpop.permute.xlu0 %718 }
  0x90   : > { %v737_v43 = vrot.slane %v736_v41, 4  ;;  %v720_v45 = vrot.slane %v719_v42, 4 }
  0x91   : > { %1115 = vrot.lane.b32.xlu1 %v1114_v58, %s2336_s8  ;;  %1098 = vrot.lane.b32.xlu0 %v2393_v8, %s2336_s8 }
  0x92   : > { %v738_v46 = vsel %vm721_vm4, %v736_v41, %v737_v43  ;;  %v722_v47 = vsel %vm721_vm4, %v719_v42, %v720_v45 }
  0x93   : > { %740 = vst [vmem:[#allocation2 + $0x48] sm:$0xc] %v738_v46  ;;  %724 = vst [vmem:[#allocation2 + $0x48] sm:$0x3] %v722_v47  ;;  %v768_v48 = vpop.permute.xlu1 %767  ;;  %v751_v49 = vpop.permute.xlu0 %750 }
  0x94   : > { %v769_v50 = vrot.slane %v768_v48, 4  ;;  %v752_v52 = vrot.slane %v751_v49, 4 }
  0x95   : > { %1147 = vrot.lane.b32.xlu1 %v1146_v61, %s2333_s5  ;;  %1130 = vrot.lane.b32.xlu0 %v2393_v8, %s2337_s9 }
  0x96   : > { %v770_v53 = vsel %vm753_vm5, %v768_v48, %v769_v50  ;;  %v754_v54 = vsel %vm753_vm5, %v751_v49, %v752_v52  ;;  %v2260_v55 = vld [vmem:[#allocation2 + $0x40] sm:$0xff]  }
  0x97   : > { %772 = vst [vmem:[#allocation2 + $0x4c] sm:$0xc] %v770_v53  ;;  %756 = vst [vmem:[#allocation2 + $0x4c] sm:$0x3] %v754_v54  ;;  %v247_v58 = vpop.permute.xlu1 %246  ;;  %v230_v62 = vpop.permute.xlu0 %229  ;;  %v2262_v63 = vld [vmem:[#allocation2] sm:$0xff]   ;;  %2112 = vmatprep.subr.bf16.mxu0 %v2260_v55 }
  0x98   : > { %v248_v9 = vrot.slane %v247_v58, 4  ;;  %v231_v10 = vrot.slane %v230_v62, 4  ;;  %2113 = vmatpush3.bf16.msra.mxu0 %v2262_v63 }
  0x99   : > { %610 = vrot.lane.b32.xlu1 %v609_v0, %s2335_s7  ;;  %594 = vrot.lane.b32.xlu0 %v2385_v6, %s2331_s30 }
  0x9a   : > { %v249_v56 = vsel %vm232_vm6, %v247_v58, %v248_v9  ;;  %v233_v61 = vsel %vm232_vm6, %v230_v62, %v231_v10 }
  0x9b   : > { %251 = vst [vmem:[#allocation2 + $0x8] sm:$0xc] %v249_v56  ;;  %235 = vst [vmem:[#allocation2 + $0x8] sm:$0x3] %v233_v61  ;;  %v279_v11 = vpop.permute.xlu1 %278  ;;  %v262_v13 = vpop.permute.xlu0 %261 }
  0x9c   : > { %v280_v14 = vrot.slane %v279_v11, 4  ;;  %v263_v15 = vrot.slane %v262_v13, 4 }
  0x9d   : > { %641 = vrot.lane.b32.xlu1 %v640_v3, %s2320_s19  ;;  %625 = vrot.lane.b32.xlu0 %v2385_v6, %s2335_s7  ;;  %v1424_v3 = vld [vmem:[#allocation2 + $0xa0] sm:$0x4]  ;;  %s2342_s19 = smov 92  }
  0x9e   : > { %v281_v59 = vsel %vm264_vm7, %v279_v11, %v280_v14  ;;  %v265_v0 = vsel %vm264_vm7, %v262_v13, %v263_v15  ;;  %v2265_v16 = vld [vmem:[#allocation2 + $0x48] sm:$0xff]   ;;  %v1425_v25 = vsel %vm1423_vm10, 1065369472, %v1424_v3  ;;  %vm1289_vm10 = vcmask 785408  }
  0x9f   : > { %283 = vst [vmem:[#allocation2 + $0xc] sm:$0xc] %v281_v59  ;;  %267 = vst [vmem:[#allocation2 + $0xc] sm:$0x3] %v265_v0  ;;  %v800_v17 = vpop.permute.xlu1 %799  ;;  %v783_v18 = vpop.permute.xlu0 %782  ;;  %2114 = vmatprep.subr.bf16.mxu0 %v2265_v16 }
  0xa0   : > { %v801_v20 = vrot.slane %v800_v17, 4  ;;  %v784_v6 = vrot.slane %v783_v18, 4  ;;  %1426 = vst [vmem:[#allocation2 + $0xa0] sm:$0x4] %v1425_v25 }
  0xa1   : > { %1367 = vrot.lane.b32.xlu1 %v1366_v7, %s2340_s17  ;;  %1350 = vrot.lane.b32.xlu0 %v2393_v8, %s2340_s17 }
  0xa2   : > { %v802_v31 = vsel %vm785_vm11, %v800_v17, %v801_v20  ;;  %v786_v37 = vsel %vm785_vm11, %v783_v18, %v784_v6 }
  0xa3   : > { %804 = vst [vmem:[#allocation2 + $0x50] sm:$0xc] %v802_v31  ;;  %788 = vst [vmem:[#allocation2 + $0x50] sm:$0x3] %v786_v37  ;;  %v832_v44 = vpop.permute.xlu1 %831  ;;  %v815_v51 = vpop.permute.xlu0 %814 }
  0xa4   : > { %v833_v57 = vrot.slane %v832_v44, 4  ;;  %v816_v60 = vrot.slane %v815_v51, 4 }
  0xa5   : > { %1399 = vrot.lane.b32.xlu1 %v1398_v12, %s2341_s18  ;;  %1382 = vrot.lane.b32.xlu0 %v2393_v8, %s2341_s18 }
  0xa6   : > { %v834_v2 = vsel %vm817_vm12, %v832_v44, %v833_v57  ;;  %v818_v7 = vsel %vm817_vm12, %v815_v51, %v816_v60  ;;  %v2267_v19 = vld [vmem:[#allocation2 + $0x8] sm:$0xff]  }
  0xa7   : > { %836 = vst [vmem:[#allocation2 + $0x54] sm:$0xc] %v834_v2  ;;  %820 = vst [vmem:[#allocation2 + $0x54] sm:$0x3] %v818_v7  ;;  %v327_v21 = vpop.permute.xlu1 %326  ;;  %v294_v22 = vpop.permute.xlu0 %293  ;;  %2115 = vmatpush3.bf16.msra.mxu0 %v2267_v19 }
  0xa8   : > { %v328_v23 = vrot.slane %v327_v21, 4  ;;  %v295_v24 = vrot.slane %v294_v22, 4 }
  0xa9   : > { %1414 = vrot.lane.b32.xlu0 %v2393_v8, %s2342_s19 }
  0xaa   : > { %v329_v5 = vsel %vm200_vm3, %v327_v21, %v328_v23  ;;  %v297_v4 = vsel %vm296_vm13, %v294_v22, %v295_v24 }
  0xab   : > { %331 = vst [vmem:[#allocation2 + $0x14] sm:$0xc] %v329_v5  ;;  %299 = vst [vmem:[#allocation2 + $0x10] sm:$0x3] %v297_v4  ;;  %v864_v12 = vpop.permute.xlu1 %863  ;;  %v847_v26 = vpop.permute.xlu0 %846 }
  0xac   : > { %v865_v28 = vrot.slane %v864_v12, 4  ;;  %v848_v29 = vrot.slane %v847_v26, 4 }
  0xae   : > { %v866_v8 = vsel %vm721_vm4, %v864_v12, %v865_v28  ;;  %v850_v30 = vsel %vm849_vm14, %v847_v26, %v848_v29  ;;  %v2268_v32 = vld [vmem:[#allocation2 + $0x50] sm:$0xff]  }
  0xaf   : > { %868 = vst [vmem:[#allocation2 + $0x58] sm:$0xc] %v866_v8  ;;  %852 = vst [vmem:[#allocation2 + $0x58] sm:$0x3] %v850_v30  ;;  %v895_v33 = vpop.permute.xlu1 %894  ;;  %v879_v34 = vpop.permute.xlu0 %878  ;;  %2116 = vmatprep.subr.bf16.mxu0 %v2268_v32 }
  0xb0   : > { %v896_v35 = vrot.slane %v895_v33, 4  ;;  %v880_v36 = vrot.slane %v879_v34, 4 }
  0xb2   : > { %v897_v38 = vsel %vm753_vm5, %v895_v33, %v896_v35  ;;  %v881_v39 = vsel %vm721_vm4, %v879_v34, %v880_v36  ;;  %v2270_v40 = vld [vmem:[#allocation2 + $0x10] sm:$0xff]   ;;  %vm1037_vm4 = vcmask 842752  }
  0xb3   : > { %899 = vst [vmem:[#allocation2 + $0x5c] sm:$0xc] %v897_v38  ;;  %883 = vst [vmem:[#allocation2 + $0x5c] sm:$0x3] %v881_v39  ;;  %v358_v41 = vpop.permute.xlu1 %357  ;;  %v342_v42 = vpop.permute.xlu0 %341  ;;  %2117 = vmatpush3.bf16.msra.mxu0 %v2270_v40 }
  0xb4   : > { %v359_v43 = vrot.slane %v358_v41, 4  ;;  %v343_v45 = vrot.slane %v342_v42, 4 }
  0xb6   : > { %v360_v46 = vsel %vm232_vm6, %v358_v41, %v359_v43  ;;  %v344_v47 = vsel %vm200_vm3, %v342_v42, %v343_v45  ;;  %vm437_vm3 = vcmask 982016  }
  0xb7   : > { %362 = vst [vmem:[#allocation2 + $0x18] sm:$0xc] %v360_v46  ;;  %346 = vst [vmem:[#allocation2 + $0x18] sm:$0x3] %v344_v47  ;;  %v389_v48 = vpop.permute.xlu1 %388  ;;  %v373_v49 = vpop.permute.xlu0 %372 }
  0xb8   : > { %v390_v50 = vrot.slane %v389_v48, 4  ;;  %v374_v52 = vrot.slane %v373_v49, 4 }
  0xba   : > { %v391_v53 = vsel %vm264_vm7, %v389_v48, %v390_v50  ;;  %v375_v54 = vsel %vm232_vm6, %v373_v49, %v374_v52  ;;  %v2271_v55 = vld [vmem:[#allocation2 + $0x58] sm:$0xff]   ;;  %vm1069_vm6 = vcmask 834560  }
  0xbb   : > { %393 = vst [vmem:[#allocation2 + $0x1c] sm:$0xc] %v391_v53  ;;  %377 = vst [vmem:[#allocation2 + $0x1c] sm:$0x3] %v375_v54  ;;  %v926_v58 = vpop.permute.xlu1 %925  ;;  %v910_v62 = vpop.permute.xlu0 %909  ;;  %2118 = vmatprep.subr.bf16.mxu0 %v2271_v55 }
  0xbc   : > { %v927_v63 = vrot.slane %v926_v58, 4  ;;  %v911_v9 = vrot.slane %v910_v62, 4 }
  0xbe   : > { %v928_v10 = vsel %vm785_vm11, %v926_v58, %v927_v63  ;;  %v912_v56 = vsel %vm753_vm5, %v910_v62, %v911_v9  ;;  %vm1005_vm5 = vcmask 850944  }
  0xbf   : > { %930 = vst [vmem:[#allocation2 + $0x60] sm:$0xc] %v928_v10  ;;  %914 = vst [vmem:[#allocation2 + $0x60] sm:$0x3] %v912_v56  ;;  %v957_v61 = vpop.permute.xlu1 %956  ;;  %v941_v11 = vpop.permute.xlu0 %940 }
  0xc0   : > { %v958_v13 = vrot.slane %v957_v61, 4  ;;  %v942_v14 = vrot.slane %v941_v11, 4 }
  0xc2   : > { %v959_v15 = vsel %vm817_vm12, %v957_v61, %v958_v13  ;;  %v943_v59 = vsel %vm785_vm11, %v941_v11, %v942_v14  ;;  %v2272_v0 = vld [vmem:[#allocation2 + $0x18] sm:$0xff]   ;;  %vm1385_vm11 = vcmask 760832  }
  0xc3   : > { %961 = vst [vmem:[#allocation2 + $0x64] sm:$0xc] %v959_v15  ;;  %945 = vst [vmem:[#allocation2 + $0x64] sm:$0x3] %v943_v59  ;;  %v420_v16 = vpop.permute.xlu1 %419  ;;  %v404_v17 = vpop.permute.xlu0 %403  ;;  %2119 = vmatpush3.bf16.msra.mxu0 %v2272_v0 }
  0xc4   : > { %v421_v18 = vrot.slane %v420_v16, 4  ;;  %v405_v1 = vrot.slane %v404_v17, 4 }
  0xc6   : > { %v422_v3 = vsel %vm296_vm13, %v420_v16, %v421_v18  ;;  %v406_v20 = vsel %vm264_vm7, %v404_v17, %v405_v1  ;;  %vm469_vm7 = vcmask 973824   ;;  %vm1637_vm13 = vcmask 1042432  }
  0xc7   : > { %424 = vst [vmem:[#allocation2 + $0x20] sm:$0xc] %v422_v3  ;;  %408 = vst [vmem:[#allocation2 + $0x20] sm:$0x3] %v406_v20  ;;  %v452_v6 = vpop.permute.xlu1 %451  ;;  %v435_v25 = vpop.permute.xlu0 %434 }
  0xc8   : > { %v453_v31 = vrot.slane %v452_v6, 4  ;;  %v436_v37 = vrot.slane %v435_v25, 4 }
  0xca   : > { %v454_v44 = vsel %vm437_vm3, %v452_v6, %v453_v31  ;;  %v438_v51 = vsel %vm437_vm3, %v435_v25, %v436_v37  ;;  %v2273_v57 = vld [vmem:[#allocation2 + $0x60] sm:$0xff]  }
  0xcb   : > { %456 = vst [vmem:[#allocation2 + $0x24] sm:$0xc] %v454_v44  ;;  %440 = vst [vmem:[#allocation2 + $0x24] sm:$0x3] %v438_v51  ;;  %v1179_v60 = vpop.permute.xlu1 %1178  ;;  %v1163_v2 = vpop.permute.xlu0 %1162  ;;  %2120 = vmatprep.subr.bf16.mxu0 %v2273_v57 }
  0xcc   : > { %v1180_v7 = vrot.slane %v1179_v60, 4  ;;  %v1164_v19 = vrot.slane %v1163_v2, 4 }
  0xce   : > { %v1181_v21 = vsel %vm1037_vm4, %v1179_v60, %v1180_v7  ;;  %v1165_v22 = vsel %vm1005_vm5, %v1163_v2, %v1164_v19 }
  0xcf   : > { %1183 = vst [vmem:[#allocation2 + $0x80] sm:$0xc] %v1181_v21  ;;  %1167 = vst [vmem:[#allocation2 + $0x80] sm:$0x3] %v1165_v22  ;;  %v1210_v23 = vpop.permute.xlu1 %1209  ;;  %v1194_v24 = vpop.permute.xlu0 %1193 }
  0xd0   : > { %v1211_v5 = vrot.slane %v1210_v23, 4  ;;  %v1195_v4 = vrot.slane %v1194_v24, 4 }
  0xd2   : > { %v1212_v12 = vsel %vm1069_vm6, %v1210_v23, %v1211_v5  ;;  %v1196_v26 = vsel %vm1037_vm4, %v1194_v24, %v1195_v4  ;;  %v2274_v27 = vld [vmem:[#allocation2 + $0x20] sm:$0xff]  }
  0xd3   : > { %1214 = vst [vmem:[#allocation2 + $0x84] sm:$0xc] %v1212_v12  ;;  %1198 = vst [vmem:[#allocation2 + $0x84] sm:$0x3] %v1196_v26  ;;  %v988_v28 = vpop.permute.xlu1 %987  ;;  %v972_v29 = vpop.permute.xlu0 %971  ;;  %2121 = vmatpush3.bf16.msra.mxu0 %v2274_v27 }
  0xd4   : > { %v989_v8 = vrot.slane %v988_v28, 4  ;;  %v973_v30 = vrot.slane %v972_v29, 4 }
  0xd6   : > { %v990_v32 = vsel %vm849_vm14, %v988_v28, %v989_v8  ;;  %v974_v33 = vsel %vm817_vm12, %v972_v29, %v973_v30  ;;  %vm1636_vm12 = vcmask 1041408   ;;  %vm1749_vm14 = vcmask 261120  }
  0xd7   : > { %992 = vst [vmem:[#allocation2 + $0x68] sm:$0xc] %v990_v32  ;;  %976 = vst [vmem:[#allocation2 + $0x68] sm:$0x3] %v974_v33  ;;  %v1020_v34 = vpop.permute.xlu1 %1019  ;;  %v1003_v35 = vpop.permute.xlu0 %1002 }
  0xd8   : > { %v1021_v36 = vrot.slane %v1020_v34, 4  ;;  %v1004_v38 = vrot.slane %v1003_v35, 4 }
  0xda   : > { %v1022_v39 = vsel %vm1005_vm5, %v1020_v34, %v1021_v36  ;;  %v1006_v40 = vsel %vm1005_vm5, %v1003_v35, %v1004_v38  ;;  %v2275_v41 = vld [vmem:[#allocation2 + $0x80] sm:$0xff]  }
  0xdb   : > { %1024 = vst [vmem:[#allocation2 + $0x6c] sm:$0xc] %v1022_v39  ;;  %1008 = vst [vmem:[#allocation2 + $0x6c] sm:$0x3] %v1006_v40  ;;  %v484_v42 = vpop.permute.xlu1 %483  ;;  %v467_v43 = vpop.permute.xlu0 %466  ;;  %2155 = vmatprep.subr.bf16.mxu1 %v2275_v41 }
  0xdc   : > { %v485_v45 = vrot.slane %v484_v42, 4  ;;  %v468_v46 = vrot.slane %v467_v43, 4  ;;  %2156 = vmatpush3.bf16.msra.mxu1 %v2275_v41 }
  0xde   : > { %v486_v47 = vsel %vm469_vm7, %v484_v42, %v485_v45  ;;  %v470_v48 = vsel %vm469_vm7, %v467_v43, %v468_v46 }
  0xdf   : > { %488 = vst [vmem:[#allocation2 + $0x28] sm:$0xc] %v486_v47  ;;  %472 = vst [vmem:[#allocation2 + $0x28] sm:$0x3] %v470_v48  ;;  %v516_v49 = vpop.permute.xlu1 %515  ;;  %v499_v50 = vpop.permute.xlu0 %498 }
  0xe0   : > { %v517_v52 = vrot.slane %v516_v49, 4  ;;  %v500_v53 = vrot.slane %v499_v50, 4 }
  0xe2   : > { %v518_v54 = vsel %vm501_vm1, %v516_v49, %v517_v52  ;;  %v502_v55 = vsel %vm501_vm1, %v499_v50, %v500_v53  ;;  %v2276_v58 = vld [vmem:[#allocation2 + $0x68] sm:$0xff]  }
  0xe3   : > { %520 = vst [vmem:[#allocation2 + $0x2c] sm:$0xc] %v518_v54  ;;  %504 = vst [vmem:[#allocation2 + $0x2c] sm:$0x3] %v502_v55  ;;  %v1241_v62 = vpop.permute.xlu1 %1240  ;;  %v1225_v63 = vpop.permute.xlu0 %1224  ;;  %2122 = vmatprep.subr.bf16.mxu0 %v2276_v58 }
  0xe4   : > { %v1242_v9 = vrot.slane %v1241_v62, 4  ;;  %v1226_v10 = vrot.slane %v1225_v63, 4 }
  0xe6   : > { %v1243_v56 = vsel %vm1101_vm8, %v1241_v62, %v1242_v9  ;;  %v1227_v61 = vsel %vm1069_vm6, %v1225_v63, %v1226_v10 }
  0xe7   : > { %1245 = vst [vmem:[#allocation2 + $0x88] sm:$0xc] %v1243_v56  ;;  %1229 = vst [vmem:[#allocation2 + $0x88] sm:$0x3] %v1227_v61  ;;  %v1272_v11 = vpop.permute.xlu1 %1271  ;;  %v1256_v13 = vpop.permute.xlu0 %1255 }
  0xe8   : > { %v1273_v14 = vrot.slane %v1272_v11, 4  ;;  %v1257_v15 = vrot.slane %v1256_v13, 4 }
  0xea   : > { %v1274_v59 = vsel %vm1133_vm9, %v1272_v11, %v1273_v14  ;;  %v1258_v0 = vsel %vm1101_vm8, %v1256_v13, %v1257_v15  ;;  %v2277_v16 = vld [vmem:[#allocation2 + $0x28] sm:$0xff]  }
  0xeb   : > { %1276 = vst [vmem:[#allocation2 + $0x8c] sm:$0xc] %v1274_v59  ;;  %1260 = vst [vmem:[#allocation2 + $0x8c] sm:$0x3] %v1258_v0  ;;  %v1052_v17 = vpop.permute.xlu1 %1051  ;;  %v1035_v18 = vpop.permute.xlu0 %1034  ;;  %2123 = vmatpush3.bf16.msra.mxu0 %v2277_v16 }
  0xec   : > { %v1053_v1 = vrot.slane %v1052_v17, 4  ;;  %v1036_v3 = vrot.slane %v1035_v18, 4 }
  0xee   : > { %v1054_v20 = vsel %vm1037_vm4, %v1052_v17, %v1053_v1  ;;  %v1038_v6 = vsel %vm1037_vm4, %v1035_v18, %v1036_v3 }
  0xef   : > { %1056 = vst [vmem:[#allocation2 + $0x70] sm:$0xc] %v1054_v20  ;;  %1040 = vst [vmem:[#allocation2 + $0x70] sm:$0x3] %v1038_v6  ;;  %v1084_v25 = vpop.permute.xlu1 %1083  ;;  %v1067_v31 = vpop.permute.xlu0 %1066 }
  0xf0   : > { %v1085_v37 = vrot.slane %v1084_v25, 4  ;;  %v1068_v44 = vrot.slane %v1067_v31, 4 }
  0xf2   : > { %v1086_v51 = vsel %vm1069_vm6, %v1084_v25, %v1085_v37  ;;  %v1070_v57 = vsel %vm1069_vm6, %v1067_v31, %v1068_v44  ;;  %v2278_v60 = vld [vmem:[#allocation2 + $0x88] sm:$0xff]  }
  0xf3   : > { %1088 = vst [vmem:[#allocation2 + $0x74] sm:$0xc] %v1086_v51  ;;  %1072 = vst [vmem:[#allocation2 + $0x74] sm:$0x3] %v1070_v57  ;;  %v548_v2 = vpop.permute.xlu1 %547  ;;  %v531_v7 = vpop.permute.xlu0 %530  ;;  %2157 = vmatprep.subr.bf16.mxu1 %v2278_v60 }
  0xf4   : > { %v549_v19 = vrot.slane %v548_v2, 4  ;;  %v532_v21 = vrot.slane %v531_v7, 4  ;;  %2158 = vmatpush3.bf16.msra.mxu1 %v2278_v60 }
  0xf6   : > { %v550_v22 = vsel %vm533_vm0, %v548_v2, %v549_v19  ;;  %v534_v23 = vsel %vm533_vm0, %v531_v7, %v532_v21  ;;  %vm1321_vm0 = vcmask 777216   ;;  %v2284_v19 = vld [vmem:[%s2810_s0] ss:$12 sps:$4 sm:$0xff]  }
  0xf7   : > { %552 = vst [vmem:[#allocation2 + $0x30] sm:$0xc] %v550_v22  ;;  %536 = vst [vmem:[#allocation2 + $0x30] sm:$0x3] %v534_v23  ;;  %v580_v24 = vpop.permute.xlu1 %579  ;;  %v563_v5 = vpop.permute.xlu0 %562  ;;  %v2288_v22 = vld [vmem:[%s2810_s0 + $0x1c] ss:$12 sps:$4 sm:$0xff]  }
  0xf8   : > { %v581_v4 = vrot.slane %v580_v24, 4  ;;  %v564_v12 = vrot.slane %v563_v5, 4 }
  0xfa   : > { %v582_v26 = vsel %vm437_vm3, %v580_v24, %v581_v4  ;;  %v566_v27 = vsel %vm565_vm2, %v563_v5, %v564_v12  ;;  %v2279_v28 = vld [vmem:[#allocation2 + $0x70] sm:$0xff]   ;;  %vm1353_vm2 = vcmask 769024   ;;  %v2343_v5 = vmov 65535   ;;  %v2291_v12 = vld [vmem:[%s2810_s0 + $0x18] ss:$12 sps:$4 sm:$0xff]  }
  0xfb   : > { %584 = vst [vmem:[#allocation2 + $0x34] sm:$0xc] %v582_v26  ;;  %568 = vst [vmem:[#allocation2 + $0x34] sm:$0x3] %v566_v27  ;;  %v1304_v29 = vpop.permute.xlu1 %1303  ;;  %v1287_v8 = vpop.permute.xlu0 %1286  ;;  %2124 = vmatprep.subr.bf16.mxu0 %v2279_v28  ;;  %v1638_v4 = vsel %vm1636_vm12, 4294967295, %v2343_v5 }
  0xfc   : > { %v1305_v30 = vrot.slane %v1304_v29, 4  ;;  %v1288_v32 = vrot.slane %v1287_v8, 4  ;;  %v1639_v26 = vsel %vm1637_vm13, %v1638_v4, 0 }
  0xfe   : > { %v1306_v33 = vsel %vm1289_vm10, %v1304_v29, %v1305_v30  ;;  %v1290_v34 = vsel %vm1289_vm10, %v1287_v8, %v1288_v32  ;;  %v2293_v29 = vld [vmem:[%s2810_s0 + $0x20] ss:$12 sps:$4 sm:$0xff]  }
  0xff   : > { %1308 = vst [vmem:[#allocation2 + $0x90] sm:$0xc] %v1306_v33  ;;  %1292 = vst [vmem:[#allocation2 + $0x90] sm:$0x3] %v1290_v34  ;;  %v1336_v35 = vpop.permute.xlu1 %1335  ;;  %v1319_v36 = vpop.permute.xlu0 %1318  ;;  %v1741_v8 = vld [vmem:[%s2811_s1] sm:$0xff] }
 0x100   : > { %v1337_v38 = vrot.slane %v1336_v35, 4  ;;  %v1320_v39 = vrot.slane %v1319_v36, 4 }
 0x102   : > { %v1338_v40 = vsel %vm1321_vm0, %v1336_v35, %v1337_v38  ;;  %v1322_v41 = vsel %vm1321_vm0, %v1319_v36, %v1320_v39  ;;  %v2280_v42 = vld [vmem:[#allocation2 + $0x30] sm:$0xff]  }
 0x103   : > { %1340 = vst [vmem:[#allocation2 + $0x94] sm:$0xc] %v1338_v40  ;;  %1324 = vst [vmem:[#allocation2 + $0x94] sm:$0x3] %v1322_v41  ;;  %v1116_v43 = vpop.permute.xlu1 %1115  ;;  %v1099_v45 = vpop.permute.xlu0 %1098  ;;  %2125 = vmatpush3.bf16.msra.mxu0 %v2280_v42 }
 0x104   : > { %v1117_v46 = vrot.slane %v1116_v43, 4  ;;  %v1100_v47 = vrot.slane %v1099_v45, 4 }
 0x106   : > { %v1118_v48 = vsel %vm1101_vm8, %v1116_v43, %v1117_v46  ;;  %v1102_v49 = vsel %vm1101_vm8, %v1099_v45, %v1100_v47 }
 0x107   : > { %1120 = vst [vmem:[#allocation2 + $0x78] sm:$0xc] %v1118_v48  ;;  %1104 = vst [vmem:[#allocation2 + $0x78] sm:$0x3] %v1102_v49  ;;  %v1148_v50 = vpop.permute.xlu1 %1147  ;;  %v1131_v52 = vpop.permute.xlu0 %1130 }
 0x108   : > { %v1149_v53 = vrot.slane %v1148_v50, 4  ;;  %v1132_v54 = vrot.slane %v1131_v52, 4 }
 0x10a   : > { %v1150_v55 = vsel %vm1005_vm5, %v1148_v50, %v1149_v53  ;;  %v1134_v58 = vsel %vm1133_vm9, %v1131_v52, %v1132_v54  ;;  %v2281_v62 = vld [vmem:[#allocation2 + $0x90] sm:$0xff]  }
 0x10b   : > { %1152 = vst [vmem:[#allocation2 + $0x7c] sm:$0xc] %v1150_v55  ;;  %1136 = vst [vmem:[#allocation2 + $0x7c] sm:$0x3] %v1134_v58  ;;  %v611_v63 = vpop.permute.xlu1 %610  ;;  %v595_v9 = vpop.permute.xlu0 %594  ;;  %2159 = vmatprep.subr.bf16.mxu1 %v2281_v62 }
 0x10c   : > { %v612_v10 = vrot.slane %v611_v63, 4  ;;  %v596_v56 = vrot.slane %v595_v9, 4  ;;  %2160 = vmatpush3.bf16.msra.mxu1 %v2281_v62 }
 0x10e   : > { %v613_v61 = vsel %vm469_vm7, %v611_v63, %v612_v10  ;;  %v597_v11 = vsel %vm437_vm3, %v595_v9, %v596_v56  ;;  %v1742_v10 = vld [vmem:[%s2811_s1 + $0x8] sm:$0xff]  ;;  %v1743_v56 = vld [vmem:[%s2811_s1 + $0x10] sm:$0xff] }
 0x10f   : > { %615 = vst [vmem:[#allocation2 + $0x38] sm:$0xc] %v613_v61  ;;  %599 = vst [vmem:[#allocation2 + $0x38] sm:$0x3] %v597_v11  ;;  %v642_v13 = vpop.permute.xlu1 %641  ;;  %v626_v14 = vpop.permute.xlu0 %625  ;;  %v1744_v61 = vld [vmem:[%s2811_s1 + $0x18] sm:$0xff] }
 0x110   : > { %v643_v15 = vrot.slane %v642_v13, 4  ;;  %v627_v59 = vrot.slane %v626_v14, 4 }
 0x112   : > { %v644_v0 = vsel %vm501_vm1, %v642_v13, %v643_v15  ;;  %v628_v16 = vsel %vm469_vm7, %v626_v14, %v627_v59  ;;  %v2282_v17 = vld [vmem:[#allocation2 + $0x78] sm:$0xff]   ;;  %vm1417_vm1 = vcmask 752640  }
 0x113   : > { %646 = vst [vmem:[#allocation2 + $0x3c] sm:$0xc] %v644_v0  ;;  %630 = vst [vmem:[#allocation2 + $0x3c] sm:$0x3] %v628_v16  ;;  %v1368_v18 = vpop.permute.xlu1 %1367  ;;  %v1351_v1 = vpop.permute.xlu0 %1350  ;;  %2126 = vmatprep.subr.bf16.mxu0 %v2282_v17 }
 0x114   : > { %v1369_v3 = vrot.slane %v1368_v18, 4  ;;  %v1352_v20 = vrot.slane %v1351_v1, 4 }
 0x116   : > { %v1370_v6 = vsel %vm1353_vm2, %v1368_v18, %v1369_v3  ;;  %v1354_v25 = vsel %vm1353_vm2, %v1351_v1, %v1352_v20 }
 0x117   : > { %1372 = vst [vmem:[#allocation2 + $0x98] sm:$0xc] %v1370_v6  ;;  %1356 = vst [vmem:[#allocation2 + $0x98] sm:$0x3] %v1354_v25  ;;  %v1400_v31 = vpop.permute.xlu1 %1399  ;;  %v1383_v37 = vpop.permute.xlu0 %1382 }
 0x118   : > { %v1401_v44 = vrot.slane %v1400_v31, 4  ;;  %v1384_v51 = vrot.slane %v1383_v37, 4 }
 0x11a   : > { %v1402_v57 = vsel %vm1385_vm11, %v1400_v31, %v1401_v44  ;;  %v1386_v60 = vsel %vm1385_vm11, %v1383_v37, %v1384_v51  ;;  %v2283_v2 = vld [vmem:[#allocation2 + $0x38] sm:$0xff]  }
 0x11b   : > { %1404 = vst [vmem:[#allocation2 + $0x9c] sm:$0xc] %v1402_v57  ;;  %1388 = vst [vmem:[#allocation2 + $0x9c] sm:$0x3] %v1386_v60  ;;  %v1415_v7 = vpop.permute.xlu0 %1414  ;;  %2127 = vmatpush3.bf16.msra.mxu0 %v2283_v2 }
 0x11c   : > { %v1416_v21 = vrot.slane %v1415_v7, 4 }
 0x11e   : > { %v1418_v23 = vsel %vm1417_vm1, %v1415_v7, %v1416_v21  ;;  %1676 = vmatmul.mubr.bf16.vlgmr.msra.gmra.mrb[0].mxu0 %v2284_v19 }
 0x11f   : > { %1420 = vst [vmem:[#allocation2 + $0xa0] sm:$0x3] %v1418_v23  ;;  %1683 = vmatprep.mubr.bf16.mxu0 %v2288_v22 }
 0x122   : > { %v2287_v24 = vld [vmem:[#allocation2 + $0x98] sm:$0xff]  }
 0x123   : > { %2161 = vmatprep.subr.bf16.mxu1 %v2287_v24 }
 0x124   : > { %2162 = vmatpush3.bf16.msra.mxu1 %v2287_v24 }
 0x126   : > { %v2290_v27 = vld [vmem:[#allocation2 + $0xa0] ss:$0 sps:$4 sm:$0x77]   ;;  %1684 = vmatmul.mubr.bf16.gmra.mrb[4].mxu0 %v2291_v12 }
 0x127   : > { %v1641_v28 = vand.u32 %v2290_v27, %v1639_v26 }
 0x129   : > { %2163 = vmatprep.subr.bf16.mxu1 %v1641_v28 }
 0x12a   : > { %2164 = vmatpush3.bf16.msra.mxu1 %v1641_v28 }
 0x12d   : > { %2166 = vmatmul.mubr.msk.bf16.vlgmr.msra.gmra.mrb[0].mxu1 %vm1629_vm15, %v2293_v29 }
 0x12e   : > { %2177 = vmatprep.mubr.msk.f32.mxu1 %vm1749_vm14, %v1741_v8 }
 0x1f1   : > { %v2128_v30 = vpop.f32.mrb[0].mxu0 }
 0x1f2   : > { %v2129_v32 = vpop.f32.mrb[1].mxu0 }
 0x1f3   : > { %v2130_v33 = vadd.f32 %v2129_v32, %v2128_v30  ;;  %v2131_v34 = vpop.f32.mrb[2].mxu0 }
 0x1f4   : > { %v2132_v35 = vpop.f32.mrb[3].mxu0 }
 0x1f5   : > { %v2133_v36 = vadd.f32 %v2132_v35, %v2131_v34 }
 0x1f9   : > { %v2134_v38 = vpop.f32.mrb[4].mxu0 }
 0x1fa   : > { %v2135_v39 = vpop.f32.mrb[5].mxu0 }
 0x1fb   : > { %v2136_v40 = vadd.f32 %v2135_v39, %v2134_v38  ;;  %v2137_v41 = vpop.f32.mrb[6].mxu0 }
 0x1fc   : > { %v2138_v42 = vpop.f32.mrb[7].mxu0 }
 0x1fd   : > { %v2139_v43 = vadd.f32 %v2138_v42, %v2137_v41 }
 0x200   : > { %v2167_v45 = vpop.f32.mrb[0].mxu1 }
 0x201   : > { %v2785_v46 = vadd.f32 %v2167_v45, %v2136_v40  ;;  %v1726_v47 = vpop.f32.mrb[1].mxu1 }
 0x202   : > { %v1727_v48 = vadd.f32 %v2130_v33, %v1726_v47  ;;  %v2168_v49 = vpop.f32.mrb[2].mxu1 }
 0x203   : > { %v1738_v50 = vadd.f32 %v2168_v49, %v2139_v43  ;;  %v1729_v52 = vpop.f32.mrb[3].mxu1  ;;  %v1747_v62 = vmul.f32 %v2785_v46, %v2785_v46 }
 0x204   : > { %v1730_v53 = vadd.f32 %v2133_v36, %v1729_v52  ;;  %v1745_v54 = vmul.f32 %v1727_v48, %v1727_v48 }
 0x205   : > { %v1748_v55 = vmul.f32 %v1738_v50, %v1738_v50 }
 0x206   : > { %v1746_v58 = vmul.f32 %v1730_v53, %v1730_v53 }
 0x207   : > { %v2187_v9 = vpack.c.bf16 %v1748_v55, %v1747_v62 }
 0x208   : > { %v2183_v63 = vpack.c.bf16 %v1746_v58, %v1745_v54 }
 0x20a   : > { %2184 = vmatprep.subr.bf16.mxu1 %v2183_v63 }
 0x20b   : > { %2186 = vmatpush3.bf16.msra.mxu1 %v2183_v63 }
 0x20c   : > { %2188 = vmatprep.subr.bf16.mxu1 %v2187_v9 }
 0x20f   : > { %2190 = vmatpush3.bf16.msra.mxu1 %v2187_v9 }
 0x212   : > { %2178 = vmatmul.mubr.msk.f32.vlgmr.msra.gmra.mrb[4].mxu1 %vm1749_vm14, %v1742_v10 }
 0x213   : > { %2180 = vmatprep.mubr.msk.f32.mxu1 %vm1749_vm14, %v1743_v56 }
 0x216   : > { %2181 = vmatmul.mubr.msk.f32.gmra.mrb[6].mxu1 %vm1749_vm14, %v1744_v61 }
 0x2e5   : > { %v2179_v11 = vpop.f32.mrb[4].mxu1 }
 0x2e6   : > { %v1848_v13 = vadd.f32 1.0, %v2179_v11  ;;  %v1860_v14 = vadd.f32 1e-08, %v2179_v11  ;;  %v1828_v15 = vpop.f32.mrb[5].mxu1 }
 0x2e7   : > { %v1847_v59 = vadd.f32 1.0, %v1828_v15  ;;  %v1859_v0 = vadd.f32 1e-08, %v1828_v15 }
 0x2e8   : > { %2294 = vrcp.f32 %v1848_v13 }
 0x2e9   : > { %2296 = vrsqrt.f32 %v1860_v14  ;;  %v2182_v16 = vpop.f32.mrb[6].mxu1 }
 0x2ea   : > { %2298 = vrcp.f32 %v1847_v59  ;;  %v1850_v17 = vadd.f32 1.0, %v2182_v16  ;;  %v1862_v18 = vadd.f32 1e-08, %v2182_v16  ;;  %v1838_v1 = vpop.f32.mrb[7].mxu1 }
 0x2eb   : > { %2300 = vrsqrt.f32 %v1859_v0  ;;  %v1849_v3 = vadd.f32 1.0, %v1838_v1  ;;  %v1861_v20 = vadd.f32 1e-08, %v1838_v1 }
 0x2ec   : > { %2302 = vrcp.f32 %v1850_v17 }
 0x2ed   : > { %2304 = vrsqrt.f32 %v1862_v18 }
 0x2ee   : > { %2306 = vrcp.f32 %v1849_v3 }
 0x2ef   : > { %2308 = vrsqrt.f32 %v1861_v20 }
 0x2f2   : > { %v2295_v6 = vpop.eup %2294 }
 0x2f3   : > { %v2297_v25 = vpop.eup %2296  ;;  %v1856_v31 = vmul.f32 %v2295_v6, %v2179_v11 }
 0x2f4   : > { %v2299_v37 = vpop.eup %2298 }
 0x2f5   : > { %v2301_v44 = vpop.eup %2300  ;;  %v1868_v51 = vmul.f32 %v2297_v25, %v1856_v31  ;;  %v1855_v57 = vmul.f32 %v2299_v37, %v1828_v15 }
 0x2f6   : > { %v2303_v60 = vpop.eup %2302 }
 0x2f7   : > { %v2305_v2 = vpop.eup %2304  ;;  %v1872_v7 = vmul.f32 %v1868_v51, %v1730_v53  ;;  %v1867_v19 = vmul.f32 %v2301_v44, %v1855_v57  ;;  %v1858_v21 = vmul.f32 %v2303_v60, %v2182_v16 }
 0x2f8   : > { %v2307_v22 = vpop.eup %2306 }
 0x2f9   : > { %v1871_v23 = vmul.f32 %v1867_v19, %v1727_v48  ;;  %v1870_v24 = vmul.f32 %v2305_v2, %v1858_v21  ;;  %v1857_v5 = vmul.f32 %v2307_v22, %v1838_v1  ;;  %v2309_v4 = vpop.eup %2308 }
 0x2fb   : > { %v2104_v12 = vpack.c.bf16 %v1872_v7, %v1871_v23  ;;  %v1874_v26 = vmul.f32 %v1870_v24, %v1738_v50  ;;  %v1869_v27 = vmul.f32 %v2309_v4, %v1857_v5 }
 0x2fd   : > { %v1873_v28 = vmul.f32 %v1869_v27, %v2785_v46  ;;  %2105 = vst [vmem:[%s170_s16] sm:$0xff] %v2104_v12  }
 0x2ff   : > { %v2109_v29 = vpack.c.bf16 %v1874_v26, %v1873_v28 }
 0x301   : > { %2111 = vst [vmem:[%s170_s16 + $0x8] sm:$0xff] %v2109_v29  }
 0x302 PF: > { %s13_s12 = sadd.s32 1, %s2316_s12  }
 0x303   : > { %p10_p4 = scmp.ge.s32.totalorder %s13_s12, 4  }
 0x305   :  { %12 = sbr.rel (!%p10_p4) target bundleno = 1 (0x1), region = 65 }

</bundles_post_ra>
